<compile_context>
chip_gen: v5e
topology: v5e:2x2
jax: 0.10.0
libtpu: 0.0.40
codegen_flags: <defaults>
</compile_context>

<pallas_src>
import functools

import jax
import jax.numpy as jnp
from jax.experimental import pallas as pl
from jax.experimental.pallas import tpu as pltpu

EPS = 1e-5


def bn_conv_bn_kernel(x_ref, w_ref, g1_ref, g2_ref, b2_ref, o_ref, *, inv_r):
    # x_ref : (Cin, Rp)   channel-major activations, zero-padded on the R axis
    # w_ref : (Cout, Cin) 1x1 conv weight
    # g1_ref: (1, Cin)    BN1 gamma (BN1 beta provably cancels out of the output)
    # g2_ref: (Cout, 1)   BN2 gamma
    # b2_ref: (Cout, 1)   BN2 beta
    # o_ref : (Cout, Rp)
    x = x_ref[...]
    cin = x.shape[0]
    rp = x.shape[1]

    # ---- BN1 statistics in ROW orientation (1, Cin): no transposes needed. ----
    ones_row = jnp.ones((1, rp), dtype=jnp.float32)
    # Per-channel sums of x as a row vector (MXU matvec, contracting the R axis;
    # padded columns are zero so they contribute nothing).
    sum_x = jax.lax.dot_general(
        ones_row, x, (((1,), (1,)), ((), ())),
        preferred_element_type=jnp.float32)                         # (1, Cin)
    # Gram matrix G = x @ x.T on the MXU; reused below for BN2 statistics.
    gram = jax.lax.dot_general(
        x, x, (((1,), (1,)), ((), ())),
        preferred_element_type=jnp.float32)                         # (Cin, Cin)
    # Per-channel sums of squares = diag(G), extracted as a row vector via a
    # sublane reduction of the eye-masked Gram (one tiny (Cin, Cin) tile).
    rows = jax.lax.broadcasted_iota(jnp.int32, (cin, cin), 0)
    cols = jax.lax.broadcasted_iota(jnp.int32, (cin, cin), 1)
    sumsq_x = jnp.sum(jnp.where(rows == cols, gram, 0.0),
                      axis=0, keepdims=True)                        # (1, Cin)

    mean1 = sum_x * inv_r
    var1 = jnp.maximum(sumsq_x * inv_r - mean1 * mean1, 0.0)        # clamp >= 0
    scale1 = g1_ref[...] * jax.lax.rsqrt(var1 + EPS)                # (1, Cin)

    # ---- BN1 folded into the conv weight (linearity).  The additive BN1 part
    # becomes a per-Cout constant after the 1x1 conv and is annihilated by
    # BN2's mean centering, so it is dropped (exact, not an approximation). ----
    w_scaled = w_ref[...] * scale1                                  # (Cout, Cin)

    # ---- Conv2d 1x1 (no bias) == matmul on the MXU ----
    y = jnp.dot(w_scaled, x, preferred_element_type=jnp.float32)    # (Cout, Rp)

    # ---- BN2 statistics via linearity (y itself is never re-read) ----
    sum_y = jnp.sum(w_scaled * sum_x, axis=1, keepdims=True)        # (Cout, 1)
    wg = jnp.dot(w_scaled, gram, preferred_element_type=jnp.float32)  # (Cout, Cin)
    sumsq_y = jnp.sum(wg * w_scaled, axis=1, keepdims=True)         # (Cout, 1)

    mean2 = sum_y * inv_r
    var2 = jnp.maximum(sumsq_y * inv_r - mean2 * mean2, 0.0)        # clamp >= 0
    scale2 = g2_ref[...] * jax.lax.rsqrt(var2 + EPS)                # (Cout, 1)
    shift2 = b2_ref[...] - mean2 * scale2                           # (Cout, 1)

    # Single fused scale/shift pass over y; lane-dense (Cout, Rp) stores.
    o_ref[...] = y * scale2 + shift2


def bn_conv_bn(x_nchw, w_oihw, g1, b1, g2, b2):
    """x_nchw: (N, 32, H, W) float32 -> (N, 96, H, W) float32 (training-mode BN)."""
    del b1  # BN1 beta cancels exactly in the forward output (see kernel comment)
    n, cin, h, w = x_nchw.shape
    cout = w_oihw.shape[0]
    r = n * h * w
    rp = pl.cdiv(r, 128) * 128  # lane-dense padded length (exact: see kernel)

    # NCHW -> channel-major (Cin, R); free (pure reshape) for N == 1.
    x2d = jnp.transpose(x_nchw, (1, 0, 2, 3)).reshape(cin, r)
    if rp != r:
        x2d = jnp.pad(x2d, ((0, 0), (0, rp - r)))
    # (Cout, Cin, 1, 1) -> (Cout, Cin); free reshape, no transpose needed.
    w2d = w_oihw.reshape(cout, cin)

    kernel = functools.partial(bn_conv_bn_kernel, inv_r=1.0 / r)

    out2d = pl.pallas_call(
        kernel,
        out_shape=jax.ShapeDtypeStruct((cout, rp), jnp.float32),
        in_specs=[pl.BlockSpec(memory_space=pltpu.MemorySpace.VMEM)] * 5,
        out_specs=pl.BlockSpec(memory_space=pltpu.MemorySpace.VMEM),
    )(
        x2d,
        w2d,
        g1.reshape(1, cin),
        g2.reshape(cout, 1),
        b2.reshape(cout, 1),
    )

    # Drop the zero padding, then (Cout, R) -> NCHW; free for N == 1.
    out2d = out2d[:, :r]
    return jnp.transpose(out2d.reshape(cout, n, h, w), (1, 0, 2, 3))


def _reference(x_nchw, w_oihw, g1, b1, g2, b2):
    """Pure-JAX reference of the same forward pass (training-mode BatchNorm)."""
    def bn(x, g, b):
        mean = jnp.mean(x, axis=(0, 2, 3), keepdims=True)
        var = jnp.mean((x - mean) ** 2, axis=(0, 2, 3), keepdims=True)
        return (x - mean) * jax.lax.rsqrt(var + EPS) * g.reshape(1, -1, 1, 1) \
            + b.reshape(1, -1, 1, 1)

    x42 = bn(x_nchw, g1, b1)
    y = jax.lax.conv_general_dilated(
        x42, w_oihw, window_strides=(1, 1), padding="VALID",
        dimension_numbers=("NCHW", "OIHW", "NCHW"))
    return bn(y, g2, b2)


if __name__ == "__main__":
    key = jax.random.PRNGKey(0)
    k_x, k_w, k_g1, k_b1, k_g2, k_b2 = jax.random.split(key, 6)

    N, CIN, COUT, H, W = 1, 32, 96, 28, 28

    x = jax.random.normal(k_x, (N, CIN, H, W), dtype=jnp.float32)
    conv_w = jax.random.normal(k_w, (COUT, CIN, 1, 1), dtype=jnp.float32) * 0.1
    gamma1 = 1.0 + 0.1 * jax.random.normal(k_g1, (CIN,), dtype=jnp.float32)
    beta1 = 0.1 * jax.random.normal(k_b1, (CIN,), dtype=jnp.float32)
    gamma2 = 1.0 + 0.1 * jax.random.normal(k_g2, (COUT,), dtype=jnp.float32)
    beta2 = 0.1 * jax.random.normal(k_b2, (COUT,), dtype=jnp.float32)

    fwd = jax.jit(bn_conv_bn)
    out = jax.block_until_ready(fwd(x, conv_w, gamma1, beta1, gamma2, beta2))
    ref = jax.block_until_ready(
        _reference(x, conv_w, gamma1, beta1, gamma2, beta2))

    assert out.shape == (N, COUT, H, W)
    assert jnp.max(jnp.abs(out - ref)) < 1e-3

    print("KERNEL_OK")
</pallas_src>

<mosaic_0001>
module attributes {stable_mosaic.version = 11 : i64} {
  func.func @bn_conv_bn_kernel(%arg0: memref<32x896xf32, #tpu.memory_space<vmem>>, %arg1: memref<96x32xf32, #tpu.memory_space<vmem>>, %arg2: memref<1x32xf32, #tpu.memory_space<vmem>>, %arg3: memref<96x1xf32, #tpu.memory_space<vmem>>, %arg4: memref<96x1xf32, #tpu.memory_space<vmem>>, %arg5: memref<96x896xf32, #tpu.memory_space<vmem>>) attributes {dimension_semantics = [], scalar_prefetch = 0 : i64, scratch_operands = 0 : i64, tpu.core_type = #tpu.core_type<tc>} {
    %c0 = arith.constant 0 : index
    %c0_0 = arith.constant 0 : index
    %0 = vector.load %arg0[%c0, %c0_0] : memref<32x896xf32, #tpu.memory_space<vmem>>, vector<32x896xf32>
    %cst = arith.constant 1.000000e+00 : f32
    %1 = vector.broadcast %cst : f32 to vector<1x896xf32>
    %cst_1 = arith.constant dense<0.000000e+00> : vector<1x32xf32>
    %2 = tpu.matmul %1, %0, %cst_1 {dimension_numbers = #tpu.dot_dimension_numbers<[1], [1], [0], [0], [0, 0, 1, 0], [], []>} : vector<1x896xf32>, vector<32x896xf32>, vector<1x32xf32> -> vector<1x32xf32>
    %cst_2 = arith.constant dense<0.000000e+00> : vector<32x32xf32>
    %3 = tpu.matmul %0, %0, %cst_2 {dimension_numbers = #tpu.dot_dimension_numbers<[1], [1], [0], [0], [0, 0, 1, 0], [], []>} : vector<32x896xf32>, vector<32x896xf32>, vector<32x32xf32> -> vector<32x32xf32>
    %4 = tpu.iota {dimensions = array<i32: 0>} : vector<32x32xi32>
    %5 = tpu.iota {dimensions = array<i32: 1>} : vector<32x32xi32>
    %6 = arith.cmpi eq, %4, %5 : vector<32x32xi32>
    %cst_3 = arith.constant 0.000000e+00 : f32
    %7 = vector.broadcast %cst_3 : f32 to vector<32x32xf32>
    %8 = arith.select %6, %3, %7 : vector<32x32xi1>, vector<32x32xf32>
    %cst_4 = arith.constant dense<0.000000e+00> : vector<32xf32>
    %9 = vector.multi_reduction <add>, %8, %cst_4 [0] : vector<32x32xf32> to vector<32xf32>
    %10 = vector.shape_cast %9 : vector<32xf32> to vector<1x32xf32>
    %cst_5 = arith.constant 0.00127551018 : f32
    %11 = vector.broadcast %cst_5 : f32 to vector<1x32xf32>
    %12 = arith.mulf %2, %11 : vector<1x32xf32>
    %cst_6 = arith.constant 0.00127551018 : f32
    %13 = vector.broadcast %cst_6 : f32 to vector<1x32xf32>
    %14 = arith.mulf %10, %13 : vector<1x32xf32>
    %15 = arith.mulf %12, %12 : vector<1x32xf32>
    %16 = arith.subf %14, %15 : vector<1x32xf32>
    %cst_7 = arith.constant 0.000000e+00 : f32
    %17 = vector.broadcast %cst_7 : f32 to vector<1x32xf32>
    %18 = arith.maximumf %16, %17 : vector<1x32xf32>
    %c0_8 = arith.constant 0 : index
    %c0_9 = arith.constant 0 : index
    %19 = vector.load %arg2[%c0_8, %c0_9] : memref<1x32xf32, #tpu.memory_space<vmem>>, vector<1x32xf32>
    %cst_10 = arith.constant 9.99999974E-6 : f32
    %20 = vector.broadcast %cst_10 : f32 to vector<1x32xf32>
    %21 = arith.addf %18, %20 : vector<1x32xf32>
    %22 = math.rsqrt %21 : vector<1x32xf32>
    %23 = arith.mulf %19, %22 : vector<1x32xf32>
    %c0_11 = arith.constant 0 : index
    %c0_12 = arith.constant 0 : index
    %24 = vector.load %arg1[%c0_11, %c0_12] : memref<96x32xf32, #tpu.memory_space<vmem>>, vector<96x32xf32>
    %25 = vector.broadcast %23 : vector<1x32xf32> to vector<96x32xf32>
    %26 = arith.mulf %24, %25 : vector<96x32xf32>
    %cst_13 = arith.constant dense<0.000000e+00> : vector<96x896xf32>
    %27 = tpu.matmul %26, %0, %cst_13 {dimension_numbers = #tpu.dot_dimension_numbers<[1], [0], [0], [1], [0, 0, 1, 1], [], []>} : vector<96x32xf32>, vector<32x896xf32>, vector<96x896xf32> -> vector<96x896xf32>
    %28 = vector.broadcast %2 : vector<1x32xf32> to vector<96x32xf32>
    %29 = arith.mulf %26, %28 : vector<96x32xf32>
    %cst_14 = arith.constant dense<0.000000e+00> : vector<96xf32>
    %30 = vector.multi_reduction <add>, %29, %cst_14 [1] : vector<96x32xf32> to vector<96xf32>
    %31 = vector.shape_cast %30 : vector<96xf32> to vector<96x1xf32>
    %cst_15 = arith.constant dense<0.000000e+00> : vector<96x32xf32>
    %32 = tpu.matmul %26, %3, %cst_15 {dimension_numbers = #tpu.dot_dimension_numbers<[1], [0], [0], [1], [0, 0, 1, 1], [], []>} : vector<96x32xf32>, vector<32x32xf32>, vector<96x32xf32> -> vector<96x32xf32>
    %33 = arith.mulf %32, %26 : vector<96x32xf32>
    %cst_16 = arith.constant dense<0.000000e+00> : vector<96xf32>
    %34 = vector.multi_reduction <add>, %33, %cst_16 [1] : vector<96x32xf32> to vector<96xf32>
    %35 = vector.shape_cast %34 : vector<96xf32> to vector<96x1xf32>
    %cst_17 = arith.constant 0.00127551018 : f32
    %36 = vector.broadcast %cst_17 : f32 to vector<96x1xf32>
    %37 = arith.mulf %31, %36 : vector<96x1xf32>
    %cst_18 = arith.constant 0.00127551018 : f32
    %38 = vector.broadcast %cst_18 : f32 to vector<96x1xf32>
    %39 = arith.mulf %35, %38 : vector<96x1xf32>
    %40 = arith.mulf %37, %37 : vector<96x1xf32>
    %41 = arith.subf %39, %40 : vector<96x1xf32>
    %cst_19 = arith.constant 0.000000e+00 : f32
    %42 = vector.broadcast %cst_19 : f32 to vector<96x1xf32>
    %43 = arith.maximumf %41, %42 : vector<96x1xf32>
    %c0_20 = arith.constant 0 : index
    %c0_21 = arith.constant 0 : index
    %44 = vector.load %arg3[%c0_20, %c0_21] : memref<96x1xf32, #tpu.memory_space<vmem>>, vector<96x1xf32>
    %cst_22 = arith.constant 9.99999974E-6 : f32
    %45 = vector.broadcast %cst_22 : f32 to vector<96x1xf32>
    %46 = arith.addf %43, %45 : vector<96x1xf32>
    %47 = math.rsqrt %46 : vector<96x1xf32>
    %48 = arith.mulf %44, %47 : vector<96x1xf32>
    %c0_23 = arith.constant 0 : index
    %c0_24 = arith.constant 0 : index
    %49 = vector.load %arg4[%c0_23, %c0_24] : memref<96x1xf32, #tpu.memory_space<vmem>>, vector<96x1xf32>
    %50 = arith.mulf %37, %48 : vector<96x1xf32>
    %51 = arith.subf %49, %50 : vector<96x1xf32>
    %52 = vector.broadcast %48 : vector<96x1xf32> to vector<96x896xf32>
    %53 = arith.mulf %27, %52 : vector<96x896xf32>
    %54 = vector.broadcast %51 : vector<96x1xf32> to vector<96x896xf32>
    %55 = arith.addf %53, %54 : vector<96x896xf32>
    %c0_25 = arith.constant 0 : index
    %c0_26 = arith.constant 0 : index
    %56 = vector.load %arg5[%c0_25, %c0_26] : memref<96x896xf32, #tpu.memory_space<vmem>>, vector<96x896xf32>
    tpu.vector_store %arg5[%c0_25, %c0_26], %55 {strides = array<i32>} : memref<96x896xf32, #tpu.memory_space<vmem>>, vector<96x896xf32>,
    return
  }
}

</mosaic_0001>

<bundles_post_ra>
// kernel: bn_conv_bn.1
= control target key start
LH: loop header
LB: loop body
LE: loop exit
PB: predicated region body
PF: predicated region fallthrough
CT: control target
= control target key end

     0   :  { %v1781_v20 = vmov 1.0   ;;  %v391_v60 = vlaneseq  ;;  %vm406_vm3 = vcmask 261120   ;;  %s3076_s0 = inlined_call_operand.vmem [shape: f32[32,896], index: 0, kind: input, shape index: {}]   ;;  %s3077_s2 = inlined_call_operand.vmem [shape: f32[1,32], index: 2, kind: input, shape index: {}]   ;;  %s3078_s1 = inlined_call_operand.vmem [shape: f32[96,32], index: 1, kind: input, shape index: {}]   ;;  %s3079_s3 = inlined_call_operand.vmem [shape: f32[96,1], index: 3, kind: input, shape index: {}]   ;;  %s3080_s4 = inlined_call_operand.vmem [shape: f32[96,1], index: 4, kind: input, shape index: {}]   ;;  %s3081_s5 = inlined_call_operand.vmem [shape: f32[96,896], index: 5, kind: output, shape index: {}]  }
   0x1   :  { %v1816_v0 = vld [vmem:[%s3076_s0 + $0xa8] sm:$0xff]  ;;  %v1821_v1 = vld [vmem:[%s3076_s0 + $0xb0] sm:$0xff]  ;;  %v1826_v2 = vld [vmem:[%s3076_s0 + $0xc0] sm:$0xff] }
   0x2   :  { %60 = vmatpush.xpose.msra.mxu2 %v1816_v0  ;;  %80 = vmatpush.xpose.msra.mxu1 %v1821_v1  ;;  %v1833_v3 = vld [vmem:[%s3076_s0 + $0xc8] sm:$0xff]  ;;  %v1840_v4 = vld [vmem:[%s3076_s0 + $0x70] sm:$0xff]  ;;  %v1845_v5 = vld [vmem:[%s3076_s0 + $0x78] sm:$0xff] }
   0x3   :  { %120 = vmatpush.xpose.msra.mxu3 %v1826_v2  ;;  %140 = vmatpush.xpose.msra.mxu0 %v1833_v3  ;;  %v1850_v6 = vld [vmem:[%s3076_s0 + $0x88] sm:$0xff]  ;;  %v1855_v7 = vld [vmem:[%s3076_s0 + $0x90] sm:$0xff]  ;;  %v1864_v8 = vld [vmem:[%s3076_s0 + $0x38] sm:$0xff] }
   0x4   :  { %v1869_v9 = vld [vmem:[%s3076_s0 + $0x40] sm:$0xff]  ;;  %v1874_v10 = vld [vmem:[%s3076_s0 + $0x50] sm:$0xff]  ;;  %v1879_v11 = vld [vmem:[%s3076_s0 + $0x58] sm:$0xff] }
   0x5   :  { %v1888_v12 = vld [vmem:[%s3076_s0] sm:$0xff]  ;;  %v1893_v13 = vld [vmem:[%s3076_s0 + $0x8] sm:$0xff]  ;;  %v1898_v14 = vld [vmem:[%s3076_s0 + $0x18] sm:$0xff] }
   0x6   :  { %61 = vmatpush.xpose.msra.mxu2 %v1840_v4  ;;  %81 = vmatpush.xpose.msra.mxu1 %v1845_v5  ;;  %v1903_v15 = vld [vmem:[%s3076_s0 + $0x20] sm:$0xff]  ;;  %v1908_v16 = vld [vmem:[%s3076_s0 + $0xb8] sm:$0xff]  ;;  %v1913_v17 = vld [vmem:[%s3076_s0 + $0xd0] sm:$0xff] }
   0x7   :  { %121 = vmatpush.xpose.msra.mxu3 %v1850_v6  ;;  %141 = vmatpush.xpose.msra.mxu0 %v1855_v7  ;;  %v1926_v18 = vld [vmem:[%s3076_s0 + $0x80] sm:$0xff]  ;;  %v1931_v19 = vld [vmem:[%s3076_s0 + $0x98] sm:$0xff]  ;;  %v1940_v21 = vld [vmem:[%s3076_s0 + $0x48] sm:$0xff] }
   0x8   :  { %v1945_v22 = vld [vmem:[%s3076_s0 + $0x60] sm:$0xff]  ;;  %v1954_v23 = vld [vmem:[%s3076_s0 + $0x10] sm:$0xff]  ;;  %v1959_v24 = vld [vmem:[%s3076_s0 + $0x28] sm:$0xff] }
   0x9   :  { %v1964_v25 = vld [vmem:[%s3076_s0 + $0xd8] sm:$0xff]  ;;  %v1976_v26 = vld [vmem:[%s3076_s0 + $0xa0] sm:$0xff]  ;;  %v1986_v27 = vld [vmem:[%s3076_s0 + $0x68] sm:$0xff] }
   0xa   :  { %62 = vmatpush.xpose.msra.mxu2 %v1864_v8  ;;  %82 = vmatpush.xpose.msra.mxu1 %v1869_v9  ;;  %v1995_v28 = vld [vmem:[%s3076_s0 + $0x30] sm:$0xff] }
   0xb   :  { %122 = vmatpush.xpose.msra.mxu3 %v1874_v10  ;;  %142 = vmatpush.xpose.msra.mxu0 %v1879_v11 }
   0xe   :  { %63 = vmatpush.xpose.msra.mxu2 %v1888_v12  ;;  %83 = vmatpush.xpose.msra.mxu1 %v1893_v13 }
   0xf   :  { %123 = vmatpush.xpose.msra.mxu3 %v1898_v14  ;;  %143 = vmatpush.xpose.msra.mxu0 %v1903_v15 }
  0x11   :  { %64 = vmatmul.f32.vlgmr.msra.gmra.mxu2 %v1781_v20  ;;  %84 = vmatmul.f32.vlgmr.msra.gmra.mxu1 %v1781_v20 }
  0x12   :  { %100 = vmatpush.xpose.msrb.mxu2 %v1908_v16  ;;  %160 = vmatpush.xpose.msrb.mxu1 %v1913_v17 }
  0x13   :  { %200 = vmatpush.xpose.msrb.mxu3 %v1816_v0  ;;  %229 = vmatpush.xpose.msrb.mxu0 %v1821_v1 }
  0x14   :  { %124 = vmatmul.f32.vlgmr.msra.gmra.mxu3 %v1781_v20  ;;  %144 = vmatmul.f32.vlgmr.msra.gmra.mxu0 %v1781_v20 }
  0x16   :  { %101 = vmatpush.xpose.msrb.mxu2 %v1926_v18  ;;  %161 = vmatpush.xpose.msrb.mxu1 %v1931_v19 }
  0x17   :  { %201 = vmatpush.xpose.msrb.mxu3 %v1840_v4  ;;  %230 = vmatpush.xpose.msrb.mxu0 %v1845_v5 }
  0x1a   :  { %102 = vmatpush.xpose.msrb.mxu2 %v1940_v21  ;;  %162 = vmatpush.xpose.msrb.mxu1 %v1945_v22 }
  0x1b   :  { %202 = vmatpush.xpose.msrb.mxu3 %v1864_v8  ;;  %231 = vmatpush.xpose.msrb.mxu0 %v1869_v9 }
  0x1e   :  { %103 = vmatpush.xpose.msrb.mxu2 %v1954_v23  ;;  %163 = vmatpush.xpose.msrb.mxu1 %v1959_v24 }
  0x1f   :  { %203 = vmatpush.xpose.msrb.mxu3 %v1888_v12  ;;  %232 = vmatpush.xpose.msrb.mxu0 %v1893_v13 }
  0x21   :  { %104 = vmatmul.f32.vlgmr.msrb.gmra.mxu2 %v1781_v20  ;;  %164 = vmatmul.f32.vlgmr.msrb.gmra.mxu1 %v1781_v20 }
  0x22   :  { %180 = vmatpush.xpose.msra.mxu2 %v1964_v25  ;;  %258 = vmatpush.xpose.msra.mxu1 %v1908_v16 }
  0x23   :  { %345 = vmatpush.xpose.msra.mxu0 %v1913_v17  ;;  %204 = vmatmul.f32.vlgmr.msrb.gmra.mxu3 %v1888_v12 }
  0x24   :  { %233 = vmatmul.f32.vlgmr.msrb.gmra.mxu0 %v1893_v13  ;;  %316 = vmatpush.xpose.msra.mxu3 %v1833_v3 }
  0x26   :  { %181 = vmatpush.xpose.msra.mxu2 %v1976_v26  ;;  %259 = vmatpush.xpose.msra.mxu1 %v1926_v18 }
  0x27   :  { %346 = vmatpush.xpose.msra.mxu0 %v1931_v19 }
  0x28   :  { %317 = vmatpush.xpose.msra.mxu3 %v1855_v7 }
  0x2a   :  { %182 = vmatpush.xpose.msra.mxu2 %v1986_v27  ;;  %260 = vmatpush.xpose.msra.mxu1 %v1940_v21 }
  0x2b   :  { %347 = vmatpush.xpose.msra.mxu0 %v1945_v22  ;;  %207 = vmatmul.f32.gmra.mxu3 %v1864_v8 }
  0x2c   :  { %236 = vmatmul.f32.gmra.mxu0 %v1869_v9  ;;  %318 = vmatpush.xpose.msra.mxu3 %v1879_v11 }
  0x2e   :  { %183 = vmatpush.xpose.msra.mxu2 %v1995_v28  ;;  %261 = vmatpush.xpose.msra.mxu1 %v1954_v23 }
  0x2f   :  { %348 = vmatpush.xpose.msra.mxu0 %v1959_v24 }
  0x30   :  { %319 = vmatpush.xpose.msra.mxu3 %v1903_v15 }
  0x31   :  { %184 = vmatmul.f32.vlgmr.msra.gmra.mxu2 %v1781_v20  ;;  %262 = vmatmul.f32.vlgmr.msra.gmra.mxu1 %v1954_v23 }
  0x32   :  { %287 = vmatpush.xpose.msrb.mxu2 %v1826_v2  ;;  %1746 = vmatpush.xpose.msrb.mxu1 %v1964_v25 }
  0x33   :  { %374 = vmatpush.xpose.msrb.mxu0 %v1964_v25  ;;  %210 = vmatmul.f32.gmra.mxu3 %v1840_v4 }
  0x34   :  { %239 = vmatmul.f32.gmra.mxu0 %v1845_v5  ;;  %566 = vmatpush.msrb.mxu3 %v1821_v1 }
  0x36   :  { %288 = vmatpush.xpose.msrb.mxu2 %v1850_v6  ;;  %1747 = vmatpush.xpose.msrb.mxu1 %v1976_v26 }
  0x37   :  { %375 = vmatpush.xpose.msrb.mxu0 %v1976_v26  ;;  %567 = vmatpush.msrb.mxu3 %v1845_v5 }
  0x39   :  { %265 = vmatmul.f32.gmra.mxu1 %v1940_v21  ;;  %568 = vmatpush.msrb.mxu3 %v1869_v9 }
  0x3a   :  { %289 = vmatpush.xpose.msrb.mxu2 %v1874_v10  ;;  %1748 = vmatpush.xpose.msrb.mxu1 %v1986_v27 }
  0x3b   :  { %376 = vmatpush.xpose.msrb.mxu0 %v1986_v27  ;;  %213 = vmatmul.f32.gmra.mxu3 %v1816_v0 }
  0x3c   :  { %242 = vmatmul.f32.gmra.mxu0 %v1821_v1  ;;  %569 = vmatpush.msrb.mxu3 %v1893_v13 }
  0x3e   :  { %290 = vmatpush.xpose.msrb.mxu2 %v1898_v14  ;;  %1749 = vmatpush.xpose.msrb.mxu1 %v1995_v28 }
  0x3f   :  { %377 = vmatpush.xpose.msrb.mxu0 %v1995_v28 }
  0x41   :  { %291 = vmatmul.f32.vlgmr.msrb.gmra.mxu2 %v1898_v14  ;;  %268 = vmatmul.f32.gmra.mxu1 %v1926_v18 }
  0x42   :  { %672 = vmatpush.msra.mxu1 %v1826_v2  ;;  %513 = vmatpush.msra.mxu2 %v1816_v0 }
  0x43   :  { %320 = vmatmul.f32.vlgmr.msra.gmra.mxu3 %v1903_v15 }
  0x44   :  { %673 = vmatpush.msra.mxu1 %v1850_v6  ;;  %514 = vmatpush.msra.mxu2 %v1840_v4 }
  0x45   :  { %349 = vmatmul.f32.vlgmr.msra.gmra.mxu0 %v1959_v24  ;;  %778 = vmatpush.msra.mxu3 %v1913_v17 }
  0x46   :  { %515 = vmatpush.msra.mxu2 %v1864_v8  ;;  %674 = vmatpush.msra.mxu1 %v1874_v10 }
  0x47   :  { %619 = vmatpush.msra.mxu0 %v1908_v16  ;;  %779 = vmatpush.msra.mxu3 %v1931_v19 }
  0x48   :  { %516 = vmatpush.msra.mxu2 %v1888_v12  ;;  %675 = vmatpush.msra.mxu1 %v1898_v14  ;;  %v397_v12 = vand.u32 127, %v391_v60 }
  0x49   :  { %294 = vmatmul.f32.gmra.mxu2 %v1874_v10  ;;  %620 = vmatpush.msra.mxu0 %v1926_v18 }
  0x4a   :  { %725 = vmatpush.msrb.mxu2 %v1833_v3  ;;  %271 = vmatmul.f32.gmra.mxu1 %v1908_v16 }
  0x4b   :  { %621 = vmatpush.msra.mxu0 %v1940_v21  ;;  %780 = vmatpush.msra.mxu3 %v1945_v22 }
  0x4c   :  { %726 = vmatpush.msrb.mxu2 %v1855_v7  ;;  %323 = vmatmul.f32.gmra.mxu3 %v1879_v11 }
  0x4d   :  { %622 = vmatpush.msra.mxu0 %v1954_v23  ;;  %781 = vmatpush.msra.mxu3 %v1959_v24 }
  0x4e   :  { %352 = vmatmul.f32.gmra.mxu0 %v1945_v22  ;;  %727 = vmatpush.msrb.mxu2 %v1879_v11 }
  0x50   :  { %728 = vmatpush.msrb.mxu2 %v1903_v15 }
  0x51   :  { %297 = vmatmul.f32.gmra.mxu2 %v1850_v6 }
  0x52   :  { %381 = vmatmul.f32.vlgmr.msrb.gmra.mxu1 %v1986_v27 }
  0x54   :  { %326 = vmatmul.f32.gmra.mxu3 %v1855_v7 }
  0x56   :  { %355 = vmatmul.f32.gmra.mxu0 %v1931_v19 }
  0x59   :  { %300 = vmatmul.f32.gmra.mxu2 %v1826_v2  ;;  %v392_v2 = vshrl.u32 %v391_v60, 7 }
  0x5a   :  { %384 = vmatmul.f32.gmra.mxu1 %v1976_v26 }
  0x5b   :  { %v393_v11 = vadd.s32 8, %v392_v2  ;;  %v394_v18 = vadd.s32 16, %v392_v2  ;;  %v395_v22 = vadd.s32 24, %v392_v2  ;;  %vm398_vm2 = vcmp.eq.s32.totalorder %v392_v2, %v397_v12 }
  0x5c   :  { %329 = vmatmul.f32.gmra.mxu3 %v1833_v3 }
  0x5d   :  { %vm399_vm0 = vcmp.eq.s32.totalorder %v393_v11, %v397_v12  ;;  %vm400_vm1 = vcmp.eq.s32.totalorder %v394_v18, %v397_v12  ;;  %vm401_vm4 = vcmp.eq.s32.totalorder %v395_v22, %v397_v12  ;;  %v443_v12 = vld [vmem:[%s3078_s1 + $0x28] sm:$0xff] }
  0x5e   :  { %358 = vmatmul.f32.gmra.mxu0 %v1913_v17 }
  0x62   :  { %387 = vmatmul.f32.gmra.mxu1 %v1964_v25 }
  0x66   :  { %378 = vmatmul.f32.vlgmr.msrb.gmra.mxu0 %v1995_v28 }
  0x67   :  { %831 = vmatpush.msrb.mxu0 %v1964_v25 }
  0x69   :  { %832 = vmatpush.msrb.mxu0 %v1976_v26 }
  0x6b   :  { %833 = vmatpush.msrb.mxu0 %v1986_v27 }
  0x6d   :  { %834 = vmatpush.msrb.mxu0 %v1995_v28 }
  0x8e   :  { %v85_v30 = vpop.f32.mrf.mxu1 }
  0x91   :  { %v2069_v29 = vpop.f32.mrf.mxu0 }
  0x94   :  { %v65_v34 = vpop.f32.mrf.mxu2 }
  0x95   :  { %v86_v17 = vadd.f32 %v85_v30, %v65_v34 }
  0x97   :  { %v2071_v31 = vpop.f32.mrf.mxu3 }
  0x9e   :  { %v2073_v33 = vpop.f32.mrf.mxu1 }
  0xa1   :  { %v234_v32 = vpop.f32.mrf.mxu0 }
  0xa4   :  { %v105_v39 = vpop.f32.mrf.mxu2 }
  0xa5   :  { %v106_v26 = vadd.f32 %v105_v39, %v86_v17  ;;  %v439_v17 = vld [vmem:[%s3078_s1 + $0x8] sm:$0xff] }
  0xa6   :  { %v205_v35 = vpop.f32.mrf.mxu3 }
  0xa7   :  { %v235_v63 = vadd.f32 %v234_v32, %v205_v35 }
  0xa9   :  { %v237_v36 = vpop.f32.mrf.mxu0 }
  0xae   :  { %v263_v37 = vpop.f32.mrf.mxu1  ;;  %v208_v38 = vpop.f32.mrf.mxu3 }
  0xaf   :  { %v238_v55 = vadd.f32 %v237_v36, %v208_v38  ;;  %v264_v5 = vadd.f32 %v263_v37, %v235_v63 }
  0xb1   :  { %v240_v40 = vpop.f32.mrf.mxu0 }
  0xb4   :  { %v2075_v43 = vpop.f32.mrf.mxu2 }
  0xb6   :  { %v266_v41 = vpop.f32.mrf.mxu1  ;;  %v211_v42 = vpop.f32.mrf.mxu3 }
  0xb7   :  { %v267_v58 = vadd.f32 %v266_v41, %v238_v55  ;;  %v241_v59 = vadd.f32 %v240_v40, %v211_v42  ;;  %v126_v41 = vadd.f32 %v2071_v31, %v106_v26 }
  0xb9   :  { %v243_v44 = vpop.f32.mrf.mxu0 }
  0xbe   :  { %v269_v45 = vpop.f32.mrf.mxu1  ;;  %v214_v46 = vpop.f32.mrf.mxu3 }
  0xbf   :  { %v270_v61 = vadd.f32 %v269_v45, %v241_v59  ;;  %v244_v8 = vadd.f32 %v243_v44, %v214_v46 }
  0xc2   :  { %v350_v48 = vpop.f32.mrf.mxu0 }
  0xc4   :  { %v292_v47 = vpop.f32.mrf.mxu2 }
  0xc5   :  { %v293_v9 = vadd.f32 %v292_v47, %v264_v5  ;;  %v146_v47 = vadd.f32 %v2069_v29, %v126_v41  ;;  %v442_v5 = vld [vmem:[%s3078_s1 + $0x20] sm:$0xff] }
  0xc6   :  { %v321_v50 = vpop.f32.mrf.mxu3 }
  0xc7   :  { %v272_v49 = vpop.f32.mrf.mxu1  ;;  %v322_v15 = vadd.f32 %v321_v50, %v293_v9  ;;  %v166_v50 = vadd.f32 %v2073_v33, %v146_v47  ;;  %v425_v33 = vld [vmem:[%s3077_s2] sm:$0x1] }
  0xc8   :  { %v273_v14 = vadd.f32 %v272_v49, %v244_v8 }
  0xc9   :  { %v351_v25 = vadd.f32 %v350_v48, %v322_v15  ;;  %v186_v31 = vadd.f32 %v2075_v43, %v166_v50 }
  0xcb   :  { %v353_v52 = vpop.f32.mrf.mxu0  ;;  %v2097_v8 = vperm.slane %v186_v31, 0 }
  0xcc   :  { %v295_v51 = vpop.f32.mrf.mxu2 }
  0xcd   :  { %v296_v62 = vadd.f32 %v295_v51, %v267_v58 }
  0xcf   :  { %v382_v53 = vpop.f32.mrf.mxu1  ;;  %v324_v54 = vpop.f32.mrf.mxu3 }
  0xd0   :  { %v325_v0 = vadd.f32 %v324_v54, %v296_v62  ;;  %v420_v54 = vmul.f32 0.0012755102, %v186_v31 }
  0xd2   :  { %v354_v10 = vadd.f32 %v353_v52, %v325_v0 }
  0xd3   :  { %v356_v57 = vpop.f32.mrf.mxu0 }
  0xd4   :  { %v298_v56 = vpop.f32.mrf.mxu2  ;;  %v383_v19 = vadd.f32 %v382_v53, %v354_v10 }
  0xd5   :  { %v299_v1 = vadd.f32 %v298_v56, %v270_v61 }
  0xd6   :  { %v403_v32 = vsel %vm399_vm0, %v383_v19, 0.0 }
  0xd7   :  { %v327_v3 = vpop.f32.mrf.mxu3  ;;  %v385_v4 = vpop.f32.mrf.mxu1  ;;  %v408_v38 = vsel %vm406_vm3, %v403_v32, 0.0  ;;  %v444_v32 = vld [vmem:[%s3078_s1 + $0x30] sm:$0xff] }
  0xd8   :  { %v328_v6 = vadd.f32 %v327_v3, %v299_v1 }
  0xda   :  { %v357_v16 = vadd.f32 %v356_v57, %v328_v6  ;;  %v422_v57 = vmul.f32 %v420_v54, %v420_v54  ;;  %v440_v6 = vld [vmem:[%s3078_s1 + $0x10] sm:$0xff] }
  0xdb   :  { %v359_v7 = vpop.f32.mrf.mxu0 }
  0xdc   :  { %v301_v13 = vpop.f32.mrf.mxu2  ;;  %v386_v23 = vadd.f32 %v385_v4, %v357_v16  ;;  %v438_v4 = vld [vmem:[%s3078_s1] sm:$0xff] }
  0xdd   :  { %v302_v20 = vadd.f32 %v301_v13, %v273_v14  ;;  %v441_v13 = vld [vmem:[%s3078_s1 + $0x18] sm:$0xff] }
  0xde   :  { %v404_v30 = vsel %vm400_vm1, %v386_v23, 0.0 }
  0xdf   :  { %v330_v21 = vpop.f32.mrf.mxu3  ;;  %v388_v28 = vpop.f32.mrf.mxu1  ;;  %v410_v44 = vsel %vm406_vm3, %v404_v30, 0.0 }
  0xe0   :  { %v331_v24 = vadd.f32 %v330_v21, %v302_v20 }
  0xe2   :  { %v360_v36 = vadd.f32 %v359_v7, %v331_v24 }
  0xe3   :  { %v379_v27 = vpop.f32.mrf.mxu0 }
  0xe4   :  { %v380_v35 = vadd.f32 %v379_v27, %v351_v25  ;;  %v389_v37 = vadd.f32 %v388_v28, %v360_v36  ;;  %v446_v27 = vld [vmem:[%s3078_s1 + $0x40] sm:$0xff]  ;;  %v445_v28 = vld [vmem:[%s3078_s1 + $0x38] sm:$0xff] }
  0xe6   :  { %v402_v34 = vsel %vm398_vm2, %v380_v35, 0.0  ;;  %v405_v39 = vsel %vm401_vm4, %v389_v37, 0.0  ;;  %933 = vmatpush.msrb.mxu1 %v389_v37 }
  0xe7   :  { %v407_v40 = vsel %vm406_vm3, %v402_v34, 0.0  ;;  %v412_v46 = vsel %vm406_vm3, %v405_v39, 0.0  ;;  %v449_v39 = vld [vmem:[%s3078_s1 + $0x58] sm:$0xff] }
  0xe8   :  { %v409_v42 = vadd.f32 %v408_v38, %v407_v40  ;;  %934 = vmatpush.msrb.mxu1 %v386_v23 }
  0xea   :  { %v411_v45 = vadd.f32 %v410_v44, %v409_v42  ;;  %935 = vmatpush.msrb.mxu1 %v383_v19  ;;  %v448_v44 = vld [vmem:[%s3078_s1 + $0x50] sm:$0xff] }
  0xec   :  { %v413_v48 = vadd.f32 %v412_v46, %v411_v45  ;;  %936 = vmatpush.msrb.mxu1 %v380_v35  ;;  %v447_v45 = vld [vmem:[%s3078_s1 + $0x48] sm:$0xff] }
  0xee   :  { %v414_v49 = vrot.slane %v413_v48, 4 }
  0xf0   :  { %v415_v51 = vadd.f32 %v414_v49, %v413_v48 }
  0xf2   :  { %v416_v52 = vrot.slane %v415_v51, 2 }
  0xf4   :  { %v417_v53 = vadd.f32 %v416_v52, %v415_v51 }
  0xf6   :  { %v418_v55 = vrot.slane %v417_v53, 1 }
  0xf8   :  { %v419_v56 = vadd.f32 %v418_v55, %v417_v53 }
  0xfa   :  { %v421_v58 = vmul.f32 0.0012755102, %v419_v56 }
  0xfc   :  { %v423_v59 = vsub.f32 %v421_v58, %v422_v57 }
  0xfe   :  { %v424_v60 = vmax.f32 %v423_v59, 0.0 }
 0x100   :  { %v426_v61 = vadd.f32 1e-05, %v424_v60 }
 0x102   :  { %1755 = vrsqrt.f32 %v426_v61  ;;  %vm433_vm6 = vweird.f32 %v426_v61 }
 0x108   :  { %v1756_v29 = vpop.eup %1755 }
 0x109   :  { %v428_v62 = vmul.f32 %v1756_v29, %v426_v61  ;;  %vm434_vm5 = vweird.f32 %v1756_v29 }
 0x10a   :  { %vm435_vm7 = vmor %vm433_vm6, %vm434_vm5 }
 0x10b   :  { %v429_v63 = vmul.f32 %v1756_v29, %v428_v62 }
 0x10d   :  { %v430_v0 = vmul.f32 0.5, %v429_v63 }
 0x10f   :  { %v431_v1 = vsub.f32 1.5, %v430_v0 }
 0x111   :  { %v432_v43 = vmul.f32 %v1756_v29, %v431_v1 }
 0x113   :  { %v436_v2 = vsel %vm435_vm7, %v1756_v29, %v432_v43 }
 0x114   :  { %v437_v3 = vmul.f32 %v436_v2, %v425_v33 }
 0x116   :  { %v451_v7 = vperm.slane %v437_v3, 0 }
 0x118   :  { %v2099_v9 = vmul.f32 %v451_v7, %v438_v4  ;;  %v2101_v10 = vmul.f32 %v451_v7, %v442_v5  ;;  %v2103_v11 = vmul.f32 %v451_v7, %v440_v6  ;;  %v2128_v18 = vmul.f32 %v451_v7, %v443_v12 }
 0x119   :  { %v2133_v22 = vmul.f32 %v451_v7, %v441_v13  ;;  %v2135_v23 = vmul.f32 %v451_v7, %v439_v17  ;;  %v2162_v30 = vmul.f32 %v451_v7, %v446_v27  ;;  %v2164_v34 = vmul.f32 %v451_v7, %v445_v28 }
 0x11a   :  { %1650 = vmatmul.msk.f32.vlgmr.msra.gmra.mxu2 %vm406_vm3, %v2099_v9  ;;  %1662 = vmatmul.msk.f32.vlgmr.msrb.gmra.mxu3 %vm406_vm3, %v2099_v9  ;;  %v877_v14 = vmul.f32 %v2097_v8, %v2101_v10  ;;  %v875_v15 = vmul.f32 %v2097_v8, %v2103_v11  ;;  %v873_v16 = vmul.f32 %v2097_v8, %v2099_v9 }
 0x11b   :  { %1674 = vmatmul.msk.f32.vlgmr.msra.gmra.mxu0 %vm406_vm3, %v2099_v9  ;;  %1686 = vmatmul.msk.f32.vlgmr.msra.gmra.mxu1 %vm406_vm3, %v2099_v9  ;;  %v878_v24 = vmul.f32 %v2097_v8, %v2128_v18  ;;  %v876_v25 = vmul.f32 %v2097_v8, %v2133_v22  ;;  %v874_v26 = vmul.f32 %v2097_v8, %v2135_v23 }
 0x11c   :  { %v897_v19 = vsel %vm406_vm3, %v877_v14, 0.0  ;;  %v891_v20 = vsel %vm406_vm3, %v875_v15, 0.0  ;;  %v885_v21 = vsel %vm406_vm3, %v873_v16, 0.0  ;;  %v2167_v38 = vmul.f32 %v451_v7, %v444_v32 }
 0x11d   :  { %898 = vadd.xlane.f32.xlu2 %v897_v19  ;;  %892 = vadd.xlane.f32.xlu1 %v891_v20  ;;  %v900_v35 = vsel %vm406_vm3, %v878_v24, 0.0  ;;  %v894_v36 = vsel %vm406_vm3, %v876_v25, 0.0  ;;  %v888_v37 = vsel %vm406_vm3, %v874_v26, 0.0  ;;  %v881_v40 = vmul.f32 %v2097_v8, %v2162_v30 }
 0x11e   :  { %886 = vadd.xlane.f32.xlu0 %v885_v21  ;;  %v880_v41 = vmul.f32 %v2097_v8, %v2164_v34  ;;  %v879_v42 = vmul.f32 %v2097_v8, %v2167_v38  ;;  %v2194_v48 = vmul.f32 %v451_v7, %v449_v39  ;;  %v2196_v49 = vmul.f32 %v451_v7, %v448_v44 }
 0x11f   :  { %v909_v46 = vsel %vm406_vm3, %v881_v40, 0.0  ;;  %v2199_v51 = vmul.f32 %v451_v7, %v447_v45 }
 0x120   :  { %v906_v47 = vsel %vm406_vm3, %v880_v41, 0.0  ;;  %v903_v50 = vsel %vm406_vm3, %v879_v42, 0.0  ;;  %v884_v31 = vmul.f32 %v2097_v8, %v2194_v48  ;;  %v883_v52 = vmul.f32 %v2097_v8, %v2196_v49 }
 0x121   :  { %v882_v53 = vmul.f32 %v2097_v8, %v2199_v51 }
 0x122   :  { %1651 = vmatmul.msk.f32.gmra.mxu2 %vm406_vm3, %v2135_v23  ;;  %1663 = vmatmul.msk.f32.gmra.mxu3 %vm406_vm3, %v2135_v23  ;;  %v918_v54 = vsel %vm406_vm3, %v884_v31, 0.0  ;;  %v915_v55 = vsel %vm406_vm3, %v883_v52, 0.0 }
 0x123   :  { %1675 = vmatmul.msk.f32.gmra.mxu0 %vm406_vm3, %v2135_v23  ;;  %1687 = vmatmul.msk.f32.gmra.mxu1 %vm406_vm3, %v2135_v23  ;;  %v912_v56 = vsel %vm406_vm3, %v882_v53, 0.0 }
 0x125   :  { %901 = vadd.xlane.f32.xlu2 %v900_v35  ;;  %895 = vadd.xlane.f32.xlu1 %v894_v36 }
 0x126   :  { %889 = vadd.xlane.f32.xlu0 %v888_v37 }
 0x12a   :  { %1652 = vmatmul.msk.f32.gmra.mxu2 %vm406_vm3, %v2103_v11  ;;  %1664 = vmatmul.msk.f32.gmra.mxu3 %vm406_vm3, %v2103_v11 }
 0x12b   :  { %1676 = vmatmul.msk.f32.gmra.mxu0 %vm406_vm3, %v2103_v11  ;;  %1688 = vmatmul.msk.f32.gmra.mxu1 %vm406_vm3, %v2103_v11 }
 0x12d   :  { %910 = vadd.xlane.f32.xlu2 %v909_v46  ;;  %907 = vadd.xlane.f32.xlu1 %v906_v47 }
 0x12e   :  { %904 = vadd.xlane.f32.xlu0 %v903_v50 }
 0x132   :  { %1653 = vmatmul.msk.f32.gmra.mxu2 %vm406_vm3, %v2133_v22  ;;  %1665 = vmatmul.msk.f32.gmra.mxu3 %vm406_vm3, %v2133_v22 }
 0x133   :  { %1677 = vmatmul.msk.f32.gmra.mxu0 %vm406_vm3, %v2133_v22  ;;  %1689 = vmatmul.msk.f32.gmra.mxu1 %vm406_vm3, %v2133_v22 }
 0x135   :  { %919 = vadd.xlane.f32.xlu2 %v918_v54  ;;  %916 = vadd.xlane.f32.xlu1 %v915_v55 }
 0x136   :  { %913 = vadd.xlane.f32.xlu0 %v912_v56 }
 0x13a   :  { %1654 = vmatmul.msk.f32.gmra.mxu2 %vm406_vm3, %v2101_v10  ;;  %1666 = vmatmul.msk.f32.gmra.mxu3 %vm406_vm3, %v2101_v10 }
 0x13b   :  { %1678 = vmatmul.msk.f32.gmra.mxu0 %vm406_vm3, %v2101_v10  ;;  %1690 = vmatmul.msk.f32.gmra.mxu1 %vm406_vm3, %v2101_v10 }
 0x142   :  { %1655 = vmatmul.msk.f32.gmra.mxu2 %vm406_vm3, %v2128_v18  ;;  %1667 = vmatmul.msk.f32.gmra.mxu3 %vm406_vm3, %v2128_v18 }
 0x143   :  { %1679 = vmatmul.msk.f32.gmra.mxu0 %vm406_vm3, %v2128_v18  ;;  %1691 = vmatmul.msk.f32.gmra.mxu1 %vm406_vm3, %v2128_v18 }
 0x14a   :  { %1656 = vmatmul.msk.f32.gmra.mxu2 %vm406_vm3, %v2167_v38  ;;  %1668 = vmatmul.msk.f32.gmra.mxu3 %vm406_vm3, %v2167_v38 }
 0x14b   :  { %1680 = vmatmul.msk.f32.gmra.mxu0 %vm406_vm3, %v2167_v38  ;;  %1692 = vmatmul.msk.f32.gmra.mxu1 %vm406_vm3, %v2167_v38 }
 0x152   :  { %1657 = vmatmul.msk.f32.gmra.mxu2 %vm406_vm3, %v2164_v34  ;;  %1669 = vmatmul.msk.f32.gmra.mxu3 %vm406_vm3, %v2164_v34 }
 0x153   :  { %1681 = vmatmul.msk.f32.gmra.mxu0 %vm406_vm3, %v2164_v34  ;;  %1693 = vmatmul.msk.f32.gmra.mxu1 %vm406_vm3, %v2164_v34 }
 0x15a   :  { %1658 = vmatmul.msk.f32.gmra.mxu2 %vm406_vm3, %v2162_v30  ;;  %1670 = vmatmul.msk.f32.gmra.mxu3 %vm406_vm3, %v2162_v30 }
 0x15b   :  { %1682 = vmatmul.msk.f32.gmra.mxu0 %vm406_vm3, %v2162_v30  ;;  %1694 = vmatmul.msk.f32.gmra.mxu1 %vm406_vm3, %v2162_v30 }
 0x162   :  { %1659 = vmatmul.msk.f32.gmra.mxu2 %vm406_vm3, %v2199_v51  ;;  %1671 = vmatmul.msk.f32.gmra.mxu3 %vm406_vm3, %v2199_v51 }
 0x163   :  { %1683 = vmatmul.msk.f32.gmra.mxu0 %vm406_vm3, %v2199_v51  ;;  %1695 = vmatmul.msk.f32.gmra.mxu1 %vm406_vm3, %v2199_v51 }
 0x16a   :  { %1660 = vmatmul.msk.f32.gmra.mxu2 %vm406_vm3, %v2196_v49  ;;  %1672 = vmatmul.msk.f32.gmra.mxu3 %vm406_vm3, %v2196_v49 }
 0x16b   :  { %1684 = vmatmul.msk.f32.gmra.mxu0 %vm406_vm3, %v2196_v49  ;;  %1696 = vmatmul.msk.f32.gmra.mxu1 %vm406_vm3, %v2196_v49 }
 0x172   :  { %1661 = vmatmul.msk.f32.gmra.mxu2 %vm406_vm3, %v2194_v48  ;;  %1673 = vmatmul.msk.f32.gmra.mxu3 %vm406_vm3, %v2194_v48 }
 0x173   :  { %1685 = vmatmul.msk.f32.gmra.mxu0 %vm406_vm3, %v2194_v48  ;;  %1697 = vmatmul.msk.f32.gmra.mxu1 %vm406_vm3, %v2194_v48 }
 0x17a   :  { %1698 = vmatmul.msk.f32.vlgmr.msrb.gmra.mxu2 %vm406_vm3, %v2099_v9  ;;  %1710 = vmatmul.msk.f32.vlgmr.msra.gmra.mxu3 %vm406_vm3, %v2099_v9 }
 0x17b   :  { %1722 = vmatmul.msk.f32.vlgmr.msrb.gmra.mxu0 %vm406_vm3, %v2099_v9  ;;  %1734 = vmatmul.msk.f32.vlgmr.msrb.gmra.mxu1 %vm406_vm3, %v2099_v9 }
 0x182   :  { %1699 = vmatmul.msk.f32.gmra.mxu2 %vm406_vm3, %v2135_v23  ;;  %1711 = vmatmul.msk.f32.gmra.mxu3 %vm406_vm3, %v2135_v23 }
 0x183   :  { %1723 = vmatmul.msk.f32.gmra.mxu0 %vm406_vm3, %v2135_v23  ;;  %1735 = vmatmul.msk.f32.gmra.mxu1 %vm406_vm3, %v2135_v23 }
 0x18a   :  { %1700 = vmatmul.msk.f32.gmra.mxu2 %vm406_vm3, %v2103_v11  ;;  %1712 = vmatmul.msk.f32.gmra.mxu3 %vm406_vm3, %v2103_v11 }
 0x18b   :  { %1724 = vmatmul.msk.f32.gmra.mxu0 %vm406_vm3, %v2103_v11  ;;  %1736 = vmatmul.msk.f32.gmra.mxu1 %vm406_vm3, %v2103_v11 }
 0x190   :  { %v893_v42 = vpop.xlane.xlu1 %892  ;;  %v2426_v45 = vpop.xlane.xlu2 %898 }
 0x192   :  { %1701 = vmatmul.msk.f32.gmra.mxu2 %vm406_vm3, %v2133_v22  ;;  %1713 = vmatmul.msk.f32.gmra.mxu3 %vm406_vm3, %v2133_v22 }
 0x193   :  { %1725 = vmatmul.msk.f32.gmra.mxu0 %vm406_vm3, %v2133_v22  ;;  %1737 = vmatmul.msk.f32.gmra.mxu1 %vm406_vm3, %v2133_v22 }
 0x198   :  { %v2314_v57 = vpop.f32.mrf.mxu1  ;;  %v896_v46 = vpop.xlane.xlu1 %895 }
 0x199   :  { %v2436_v31 = vpop.xlane.xlu2 %901 }
 0x19a   :  { %1702 = vmatmul.msk.f32.gmra.mxu2 %vm406_vm3, %v2101_v10  ;;  %1714 = vmatmul.msk.f32.gmra.mxu3 %vm406_vm3, %v2101_v10 }
 0x19b   :  { %1726 = vmatmul.msk.f32.gmra.mxu0 %vm406_vm3, %v2101_v10  ;;  %1738 = vmatmul.msk.f32.gmra.mxu1 %vm406_vm3, %v2101_v10 }
 0x19d   :  { %v2430_v50 = vpop.f32.mrf.mxu2 }
 0x1a0   :  { %v2324_v58 = vpop.f32.mrf.mxu1  ;;  %v2438_v52 = vpop.xlane.xlu1 %907 }
 0x1a2   :  { %1703 = vmatmul.msk.f32.gmra.mxu2 %vm406_vm3, %v2128_v18  ;;  %1715 = vmatmul.msk.f32.gmra.mxu3 %vm406_vm3, %v2128_v18 }
 0x1a3   :  { %1727 = vmatmul.msk.f32.gmra.mxu0 %vm406_vm3, %v2128_v18  ;;  %1739 = vmatmul.msk.f32.gmra.mxu1 %vm406_vm3, %v2128_v18 }
 0x1a5   :  { %v2442_v53 = vpop.f32.mrf.mxu2 }
 0x1a8   :  { %v2334_v59 = vpop.f32.mrf.mxu1 }
 0x1aa   :  { %1704 = vmatmul.msk.f32.gmra.mxu2 %vm406_vm3, %v2167_v38  ;;  %1716 = vmatmul.msk.f32.gmra.mxu3 %vm406_vm3, %v2167_v38 }
 0x1ab   :  { %1728 = vmatmul.msk.f32.gmra.mxu0 %vm406_vm3, %v2167_v38  ;;  %1740 = vmatmul.msk.f32.gmra.mxu1 %vm406_vm3, %v2167_v38 }
 0x1b0   :  { %v2344_v60 = vpop.f32.mrf.mxu1 }
 0x1b2   :  { %1705 = vmatmul.msk.f32.gmra.mxu2 %vm406_vm3, %v2164_v34  ;;  %1717 = vmatmul.msk.f32.gmra.mxu3 %vm406_vm3, %v2164_v34 }
 0x1b3   :  { %1729 = vmatmul.msk.f32.gmra.mxu0 %vm406_vm3, %v2164_v34  ;;  %1741 = vmatmul.msk.f32.gmra.mxu1 %vm406_vm3, %v2164_v34 }
 0x1b8   :  { %v2354_v61 = vpop.f32.mrf.mxu1 }
 0x1ba   :  { %1706 = vmatmul.msk.f32.gmra.mxu2 %vm406_vm3, %v2162_v30  ;;  %1718 = vmatmul.msk.f32.gmra.mxu3 %vm406_vm3, %v2162_v30 }
 0x1bb   :  { %1730 = vmatmul.msk.f32.gmra.mxu0 %vm406_vm3, %v2162_v30  ;;  %1742 = vmatmul.msk.f32.gmra.mxu1 %vm406_vm3, %v2162_v30 }
 0x1c0   :  { %v2364_v29 = vpop.f32.mrf.mxu1 }
 0x1c2   :  { %1707 = vmatmul.msk.f32.gmra.mxu2 %vm406_vm3, %v2199_v51  ;;  %1719 = vmatmul.msk.f32.gmra.mxu3 %vm406_vm3, %v2199_v51 }
 0x1c3   :  { %1731 = vmatmul.msk.f32.gmra.mxu0 %vm406_vm3, %v2199_v51  ;;  %1743 = vmatmul.msk.f32.gmra.mxu1 %vm406_vm3, %v2199_v51 }
 0x1c8   :  { %v2374_v62 = vpop.f32.mrf.mxu1 }
 0x1ca   :  { %1708 = vmatmul.msk.f32.gmra.mxu2 %vm406_vm3, %v2196_v49  ;;  %1720 = vmatmul.msk.f32.gmra.mxu3 %vm406_vm3, %v2196_v49 }
 0x1cb   :  { %1732 = vmatmul.msk.f32.gmra.mxu0 %vm406_vm3, %v2196_v49  ;;  %1744 = vmatmul.msk.f32.gmra.mxu1 %vm406_vm3, %v2196_v49 }
 0x1d0   :  { %v2384_v63 = vpop.f32.mrf.mxu1 }
 0x1d1   :  { %3082 = vst [vmem:[#allocation2_spill] sm:$0xff] %v2384_v63 }
 0x1d2   :  { %1709 = vmatmul.msk.f32.gmra.mxu2 %vm406_vm3, %v2194_v48  ;;  %1721 = vmatmul.msk.f32.gmra.mxu3 %vm406_vm3, %v2194_v48 }
 0x1d3   :  { %1733 = vmatmul.msk.f32.gmra.mxu0 %vm406_vm3, %v2194_v48  ;;  %1745 = vmatmul.msk.f32.gmra.mxu1 %vm406_vm3, %v2194_v48 }
 0x1d8   :  { %v2394_v0 = vpop.f32.mrf.mxu1 }
 0x1e0   :  { %v2396_v1 = vpop.f32.mrf.mxu1 }
 0x1e1   :  { %3083 = vst [vmem:[#allocation3_spill] sm:$0xff] %v2396_v1 }
 0x1e8   :  { %v2398_v33 = vpop.f32.mrf.mxu1 }
 0x1e9   :  { %3084 = vst [vmem:[#allocation4_spill] sm:$0xff] %v2398_v33 }
 0x1f0   :  { %v2400_v43 = vpop.f32.mrf.mxu1 }
 0x1f1   :  { %3085 = vst [vmem:[#allocation5_spill] sm:$0xff] %v2400_v43 }
 0x1f8   :  { %v938_v2 = vpop.f32.mrf.mxu1 }
 0x1f9   :  { %v974_v3 = vmul.f32 %v938_v2, %v2099_v9  ;;  %v2450_v2 = vpop.xlane.xlu2 %910 }
 0x1fb   :  { %v986_v4 = vsel %vm406_vm3, %v974_v3, 0.0  ;;  %v2452_v3 = vpop.xlane.xlu1 %916 }
 0x1fc   :  { %987 = vadd.xlane.f32.xlu0 %v986_v4  ;;  %v2627_v43 = vmul.f32 0.0012755102, %v2452_v3  ;;  %v1089_v3 = vld [vmem:[%s3079_s3 + $0x38] sm:$0xff] }
 0x200   :  { %v941_v5 = vpop.f32.mrf.mxu1 }
 0x201   :  { %v975_v6 = vmul.f32 %v941_v5, %v2135_v23 }
 0x203   :  { %v989_v7 = vsel %vm406_vm3, %v975_v6, 0.0 }
 0x204   :  { %990 = vadd.xlane.f32.xlu1 %v989_v7  ;;  %v1782_v7 = vmov 0  }
 0x205   :  { %1752 = vset.pattern.permute.xlu0 %v1782_v7  ;;  %1753 = vset.pattern.permute.xlu1 %v1782_v7 }
 0x206   :  { %1754 = vset.pattern.permute.xlu2 %v1782_v7 }
 0x208   :  { %v944_v8 = vpop.f32.mrf.mxu1 }
 0x209   :  { %v976_v12 = vmul.f32 %v944_v8, %v2103_v11 }
 0x20b   :  { %v992_v13 = vsel %vm406_vm3, %v976_v12, 0.0  ;;  %v2456_v12 = vpop.f32.mrf.mxu2 }
 0x20c   :  { %993 = vadd.xlane.f32.xlu2 %v992_v13 }
 0x210   :  { %v947_v14 = vpop.f32.mrf.mxu1 }
 0x211   :  { %v977_v15 = vmul.f32 %v947_v14, %v2133_v22 }
 0x213   :  { %v995_v9 = vsel %vm406_vm3, %v977_v15, 0.0 }
 0x214   :  { %996 = vadd.xlane.f32.xlu0 %v995_v9 }
 0x218   :  { %v950_v16 = vpop.f32.mrf.mxu1 }
 0x219   :  { %v978_v17 = vmul.f32 %v950_v16, %v2101_v10 }
 0x21b   :  { %v998_v19 = vsel %vm406_vm3, %v978_v17, 0.0  ;;  %v2464_v17 = vpop.xlane.xlu2 %919 }
 0x21c   :  { %999 = vadd.xlane.f32.xlu1 %v998_v19 }
 0x220   :  { %v953_v20 = vpop.f32.mrf.mxu1 }
 0x221   :  { %v979_v21 = vmul.f32 %v953_v20, %v2128_v18 }
 0x223   :  { %v1001_v11 = vsel %vm406_vm3, %v979_v21, 0.0 }
 0x224   :  { %1002 = vadd.xlane.f32.xlu2 %v1001_v11 }
 0x228   :  { %v956_v23 = vpop.f32.mrf.mxu1 }
 0x229   :  { %v980_v24 = vmul.f32 %v956_v23, %v2167_v38  ;;  %v887_v38 = vpop.xlane.xlu0 %886  ;;  %v2468_v23 = vmul.f32 0.0012755102, %v893_v42 }
 0x22a   :  { %v2448_v56 = vmul.f32 0.0012755102, %v887_v38 }
 0x22b   :  { %v1004_v22 = vsel %vm406_vm3, %v980_v24, 0.0 }
 0x22c   :  { %1005 = vadd.xlane.f32.xlu0 %v1004_v22  ;;  %v1046_v5 = vmul.f32 %v2448_v56, %v2448_v56  ;;  %v2470_v22 = vpop.f32.mrf.mxu2 }
 0x230   :  { %v959_v25 = vpop.f32.mrf.mxu1 }
 0x231   :  { %v981_v26 = vmul.f32 %v959_v25, %v2164_v34  ;;  %v890_v39 = vpop.xlane.xlu0 %889 }
 0x232   :  { %v2458_v13 = vmul.f32 0.0012755102, %v890_v39 }
 0x233   :  { %v1007_v10 = vsel %vm406_vm3, %v981_v26, 0.0 }
 0x234   :  { %1008 = vadd.xlane.f32.xlu1 %v1007_v10  ;;  %v1047_v20 = vmul.f32 %v2458_v13, %v2458_v13  ;;  %v2482_v39 = vpop.f32.mrf.mxu2 }
 0x238   :  { %v962_v27 = vpop.f32.mrf.mxu1 }
 0x239   :  { %v982_v28 = vmul.f32 %v962_v27, %v2162_v30  ;;  %v2428_v47 = vpop.xlane.xlu0 %904 }
 0x23b   :  { %v1010_v18 = vsel %vm406_vm3, %v982_v28, 0.0 }
 0x23c   :  { %1011 = vadd.xlane.f32.xlu2 %v1010_v18 }
 0x240   :  { %v965_v32 = vpop.f32.mrf.mxu1 }
 0x241   :  { %v983_v35 = vmul.f32 %v965_v32, %v2199_v51  ;;  %v2432_v51 = vpop.f32.mrf.mxu0  ;;  %v1048_v32 = vmul.f32 %v2468_v23, %v2468_v23 }
 0x243   :  { %v1013_v36 = vsel %vm406_vm3, %v983_v35, 0.0 }
 0x244   :  { %1014 = vadd.xlane.f32.xlu0 %v1013_v36 }
 0x248   :  { %v968_v37 = vpop.f32.mrf.mxu1 }
 0x249   :  { %v984_v40 = vmul.f32 %v968_v37, %v2196_v49  ;;  %v2434_v49 = vpop.f32.mrf.mxu3  ;;  %v2444_v54 = vpop.f32.mrf.mxu0 }
 0x24b   :  { %v1016_v34 = vsel %vm406_vm3, %v984_v40, 0.0  ;;  %v2478_v40 = vmul.f32 0.0012755102, %v896_v46 }
 0x24c   :  { %1017 = vadd.xlane.f32.xlu1 %v1016_v34 }
 0x24d   :  { %v1049_v46 = vmul.f32 %v2478_v40, %v2478_v40 }
 0x250   :  { %v971_v41 = vpop.f32.mrf.mxu1 }
 0x251   :  { %v985_v30 = vmul.f32 %v971_v41, %v2194_v48  ;;  %v2440_v48 = vpop.xlane.xlu0 %913  ;;  %v2446_v55 = vpop.f32.mrf.mxu3 }
 0x252   :  { %v2460_v14 = vpop.f32.mrf.mxu0 }
 0x253   :  { %v1019_v44 = vsel %vm406_vm3, %v985_v30, 0.0 }
 0x254   :  { %1020 = vadd.xlane.f32.xlu2 %v1019_v44 }
 0x259   :  { %v2462_v9 = vpop.f32.mrf.mxu3 }
 0x25a   :  { %v2472_v26 = vpop.f32.mrf.mxu0 }
 0x261   :  { %v2474_v27 = vpop.f32.mrf.mxu3 }
 0x262   :  { %v2489_v7 = vpop.f32.mrf.mxu0 }
 0x26f   :  { %v988_v4 = vpop.xlane.xlu0 %987 }
 0x270   :  { %v1034_v6 = vmul.f32 0.0012755102, %v988_v4 }
 0x272   :  { %v1058_v8 = vsub.f32 %v1034_v6, %v1046_v5  ;;  %v1082_v5 = vld [vmem:[%s3079_s3] sm:$0xff] }
 0x274   :  { %v1070_v15 = vmax.f32 %v1058_v8, 0.0 }
 0x276   :  { %v1094_v16 = vadd.f32 1e-05, %v1070_v15  ;;  %v2492_v15 = vpop.f32.mrf.mxu3 }
 0x277   :  { %v991_v19 = vpop.xlane.xlu1 %990 }
 0x278   :  { %1757 = vrsqrt.f32 %v1094_v16  ;;  %v1035_v21 = vmul.f32 0.0012755102, %v991_v19  ;;  %vm1112_vm9 = vweird.f32 %v1094_v16 }
 0x27a   :  { %v1059_v11 = vsub.f32 %v1035_v21, %v1047_v20 }
 0x27c   :  { %v1071_v24 = vmax.f32 %v1059_v11, 0.0 }
 0x27e   :  { %v1758_v25 = vpop.eup %1757  ;;  %v1095_v10 = vadd.f32 1e-05, %v1071_v24  ;;  %v1238_v24 = vld [vmem:[%s3080_s4] sm:$0xff] }
 0x27f   :  { %v1107_v28 = vmul.f32 %v1758_v25, %v1094_v16  ;;  %v994_v18 = vpop.xlane.xlu2 %993  ;;  %vm1113_vm8 = vweird.f32 %v1758_v25 }
 0x280   :  { %1759 = vrsqrt.f32 %v1095_v10  ;;  %v1036_v35 = vmul.f32 0.0012755102, %v994_v18  ;;  %vm1114_vm10 = vmor %vm1112_vm9, %vm1113_vm8  ;;  %vm1122_vm12 = vweird.f32 %v1095_v10 }
 0x281   :  { %v1108_v36 = vmul.f32 %v1758_v25, %v1107_v28  ;;  %v2498_v28 = vmul.f32 0.0012755102, %v2426_v45  ;;  %v1083_v45 = vld [vmem:[%s3079_s3 + $0x8] sm:$0xff] }
 0x282   :  { %v1060_v37 = vsub.f32 %v1036_v35, %v1048_v32 }
 0x283   :  { %v1109_v38 = vmul.f32 0.5, %v1108_v36 }
 0x284   :  { %v1072_v34 = vmax.f32 %v1060_v37, 0.0 }
 0x285   :  { %v1110_v41 = vsub.f32 1.5, %v1109_v38 }
 0x286   :  { %v1760_v42 = vpop.eup %1759  ;;  %v2480_v30 = vadd.f32 1e-05, %v1072_v34 }
 0x287   :  { %v1117_v44 = vmul.f32 %v1760_v42, %v1095_v10  ;;  %v997_v4 = vpop.xlane.xlu0 %996  ;;  %v1111_v6 = vmul.f32 %v1758_v25, %v1110_v41  ;;  %vm1123_vm11 = vweird.f32 %v1760_v42  ;;  %v2512_v10 = vpop.f32.mrf.mxu0 }
 0x288   :  { %1761 = vrsqrt.f32 %v2480_v30  ;;  %v1037_v8 = vmul.f32 0.0012755102, %v997_v4  ;;  %vm1124_vm13 = vmor %vm1122_vm12, %vm1123_vm11  ;;  %v2510_v4 = vpop.f32.mrf.mxu2  ;;  %vm1132_vm15 = vweird.f32 %v2480_v30 }
 0x289   :  { %v1118_v19 = vmul.f32 %v1760_v42, %v1117_v44  ;;  %v1115_v16 = vsel %vm1114_vm10, %v1758_v25, %v1111_v6  ;;  %v1050_v44 = vmul.f32 %v2498_v28, %v2498_v28 }
 0x28a   :  { %v1061_v20 = vsub.f32 %v1037_v8, %v1049_v46  ;;  %v1226_v21 = vmul.f32 %v1115_v16, %v1082_v5 }
 0x28b   :  { %v1119_v11 = vmul.f32 0.5, %v1118_v19  ;;  %v2514_v19 = vpop.f32.mrf.mxu3 }
 0x28c   :  { %v1073_v18 = vmax.f32 %v1061_v20, 0.0  ;;  %1276 = vperm.xlu0 %1752, %v1226_v21   ;;  %v1250_v32 = vmul.f32 %v1226_v21, %v2448_v56  ;;  %v1239_v20 = vld [vmem:[%s3080_s4 + $0x8] sm:$0xff]  ;;  %v2520_v21 = vmul.f32 0.0012755102, %v2436_v31 }
 0x28d   :  { %v1120_v35 = vsub.f32 1.5, %v1119_v11 }
 0x28e   :  { %v1762_v36 = vpop.eup %1761  ;;  %v2501_v37 = vadd.f32 1e-05, %v1073_v18  ;;  %v1262_v25 = vsub.f32 %v1238_v24, %v1250_v32 }
 0x28f   :  { %v1121_v38 = vmul.f32 %v1760_v42, %v1120_v35  ;;  %v1127_v34 = vmul.f32 %v1762_v36, %v2480_v30  ;;  %v1000_v41 = vpop.xlane.xlu1 %999  ;;  %vm1133_vm14 = vweird.f32 %v1762_v36 }
 0x290   :  { %1763 = vrsqrt.f32 %v2501_v37  ;;  %v1038_v56 = vmul.f32 0.0012755102, %v1000_v41  ;;  %1420 = vperm.xlu1 %1753, %v1262_v25   ;;  %v1051_v41 = vmul.f32 %v2520_v21, %v2520_v21  ;;  %vm1134_vm0 = vmor %vm1132_vm15, %vm1133_vm14  ;;  %vm1142_vm2 = vweird.f32 %v2501_v37 }
 0x291   :  { %v1128_v5 = vmul.f32 %v1762_v36, %v1127_v34  ;;  %v1125_v6 = vsel %vm1124_vm13, %v1760_v42, %v1121_v38  ;;  %v1084_v34 = vld [vmem:[%s3079_s3 + $0x10] sm:$0xff] }
 0x292   :  { %v1062_v46 = vsub.f32 %v1038_v56, %v1050_v44  ;;  %v1227_v8 = vmul.f32 %v1125_v6, %v1083_v45 }
 0x293   :  { %v1129_v16 = vmul.f32 0.5, %v1128_v5  ;;  %v2533_v5 = vpop.f32.mrf.mxu2 }
 0x294   :  { %v1074_v11 = vmax.f32 %v1062_v46, 0.0  ;;  %v1251_v24 = vmul.f32 %v1227_v8, %v2458_v13  ;;  %v2536_v46 = vmul.f32 0.0012755102, %v2428_v47 }
 0x295   :  { %v1130_v18 = vsub.f32 1.5, %v1129_v16  ;;  %v2538_v16 = vpop.f32.mrf.mxu0 }
 0x296   :  { %v1764_v42 = vpop.eup %1763  ;;  %v2523_v32 = vadd.f32 1e-05, %v1074_v11  ;;  %v1263_v35 = vsub.f32 %v1239_v20, %v1251_v24  ;;  %v2540_v11 = vpop.f32.mrf.mxu3 }
 0x297   :  { %v1137_v25 = vmul.f32 %v1764_v42, %v2501_v37  ;;  %v1003_v38 = vpop.xlane.xlu2 %1002  ;;  %v1131_v31 = vmul.f32 %v1762_v36, %v1130_v18  ;;  %vm1143_vm1 = vweird.f32 %v1764_v42 }
 0x298   :  { %1765 = vrsqrt.f32 %v2523_v32  ;;  %v1039_v13 = vmul.f32 0.0012755102, %v1003_v38  ;;  %1425 = vperm.xlu0 %1752, %v1263_v35   ;;  %1281 = vperm.xlu1 %1753, %v1227_v8   ;;  %v1240_v38 = vld [vmem:[%s3080_s4 + $0x10] sm:$0xff]  ;;  %vm1144_vm3 = vmor %vm1142_vm2, %vm1143_vm1  ;;  %vm1152_vm5 = vweird.f32 %v2523_v32 }
 0x299   :  { %v1138_v45 = vmul.f32 %v1764_v42, %v1137_v25  ;;  %v1135_v44 = vsel %vm1134_vm0, %v1762_v36, %v1131_v31  ;;  %v1052_v31 = vmul.f32 %v2536_v46, %v2536_v46 }
 0x29a   :  { %v1063_v30 = vsub.f32 %v1039_v13, %v1051_v41  ;;  %v1228_v56 = vmul.f32 %v1135_v44, %v1084_v34  ;;  %v1085_v34 = vld [vmem:[%s3079_s3 + $0x18] sm:$0xff] }
 0x29b   :  { %v1139_v6 = vmul.f32 0.5, %v1138_v45  ;;  %v2563_v33 = vpop.f32.mrf.mxu2 }
 0x29c   :  { %v1075_v20 = vmax.f32 %v1063_v30, 0.0  ;;  %1286 = vperm.xlu2 %1754, %v1228_v56   ;;  %v1252_v36 = vmul.f32 %v1228_v56, %v2468_v23  ;;  %v1241_v56 = vld [vmem:[%s3080_s4 + $0x18] sm:$0xff] }
 0x29d   :  { %v1140_v24 = vsub.f32 1.5, %v1139_v6  ;;  %v2560_v6 = vmul.f32 0.0012755102, %v2438_v52 }
 0x29e   :  { %v1766_v8 = vpop.eup %1765  ;;  %v2542_v18 = vadd.f32 1e-05, %v1075_v20  ;;  %v1264_v45 = vsub.f32 %v1240_v38, %v1252_v36  ;;  %v2569_v38 = vpop.f32.mrf.mxu3 }
 0x29f   :  { %v1141_v35 = vmul.f32 %v1764_v42, %v1140_v24  ;;  %v1147_v25 = vmul.f32 %v1766_v8, %v2523_v32  ;;  %v1006_v47 = vpop.xlane.xlu0 %1005  ;;  %vm1153_vm4 = vweird.f32 %v1766_v8 }
 0x2a0   :  { %1767 = vrsqrt.f32 %v2542_v18  ;;  %v1040_v23 = vmul.f32 0.0012755102, %v1006_v47  ;;  %vm1154_vm6 = vmor %vm1152_vm5, %vm1153_vm4  ;;  %vm1162_vm8 = vweird.f32 %v2542_v18 }
 0x2a1   :  { %v1148_v41 = vmul.f32 %v1766_v8, %v1147_v25  ;;  %v1145_v37 = vsel %vm1144_vm3, %v1764_v42, %v1141_v35  ;;  %v2565_v35 = vpop.f32.mrf.mxu0 }
 0x2a2   :  { %v1064_v13 = vsub.f32 %v1040_v23, %v1052_v31  ;;  %v1229_v44 = vmul.f32 %v1145_v37, %v1085_v34  ;;  %3086 = vst [vmem:[#allocation6_spill] sm:$0xff] %v2565_v35  ;;  %v1053_v23 = vmul.f32 %v2560_v6, %v2560_v6 }
 0x2a3   :  { %v1149_v30 = vmul.f32 0.5, %v1148_v41 }
 0x2a4   :  { %v1076_v20 = vmax.f32 %v1064_v13, 0.0  ;;  %1430 = vperm.xlu2 %1754, %v1264_v45   ;;  %v1253_v24 = vmul.f32 %v1229_v44, %v2478_v40  ;;  %v1086_v40 = vld [vmem:[%s3079_s3 + $0x20] sm:$0xff] }
 0x2a5   :  { %v1150_v47 = vsub.f32 1.5, %v1149_v30 }
 0x2a6   :  { %v1768_v42 = vpop.eup %1767  ;;  %v2567_v36 = vadd.f32 1e-05, %v1076_v20  ;;  %v1265_v25 = vsub.f32 %v1241_v56, %v1253_v24  ;;  %v1242_v56 = vld [vmem:[%s3080_s4 + $0x20] sm:$0xff]  ;;  %v2583_v20 = vmul.f32 0.0012755102, %v2450_v2  ;;  %v1087_v2 = vld [vmem:[%s3079_s3 + $0x28] sm:$0xff] }
 0x2a7   :  { %v1151_v34 = vmul.f32 %v1766_v8, %v1150_v47  ;;  %v1157_v52 = vmul.f32 %v1768_v42, %v2542_v18  ;;  %v1009_v31 = vpop.xlane.xlu1 %1008  ;;  %vm1163_vm7 = vweird.f32 %v1768_v42  ;;  %v2601_v18 = vpop.f32.mrf.mxu3 }
 0x2a8   :  { %1769 = vrsqrt.f32 %v2567_v36  ;;  %v1041_v41 = vmul.f32 0.0012755102, %v1009_v31  ;;  %1435 = vperm.xlu1 %1753, %v1265_v25   ;;  %vm1164_vm9 = vmor %vm1162_vm8, %vm1163_vm7  ;;  %vm1172_vm11 = vweird.f32 %v2567_v36 }
 0x2a9   :  { %v1158_v37 = vmul.f32 %v1768_v42, %v1157_v52  ;;  %v1155_v13 = vsel %vm1154_vm6, %v1766_v8, %v1151_v34  ;;  %v2588_v34 = vpop.f32.mrf.mxu2 }
 0x2aa   :  { %v1065_v45 = vsub.f32 %v1041_v41, %v1053_v23  ;;  %v1230_v30 = vmul.f32 %v1155_v13, %v1086_v40  ;;  %v2599_v41 = vpop.f32.mrf.mxu0 }
 0x2ab   :  { %v1159_v32 = vmul.f32 0.5, %v1158_v37 }
 0x2ac   :  { %v1077_v24 = vmax.f32 %v1065_v45, 0.0  ;;  %1291 = vperm.xlu2 %1754, %v1229_v44   ;;  %v1254_v47 = vmul.f32 %v1230_v30, %v2498_v28  ;;  %v1054_v28 = vmul.f32 %v2583_v20, %v2583_v20 }
 0x2ad   :  { %v1160_v1 = vsub.f32 1.5, %v1159_v32 }
 0x2ae   :  { %v1770_v31 = vpop.eup %1769  ;;  %v2586_v25 = vadd.f32 1e-05, %v1077_v24  ;;  %v1266_v8 = vsub.f32 %v1242_v56, %v1254_v47 }
 0x2af   :  { %v1167_v52 = vmul.f32 %v1770_v31, %v2567_v36  ;;  %v1012_v40 = vpop.xlane.xlu2 %1011  ;;  %v1161_v44 = vmul.f32 %v1768_v42, %v1160_v1  ;;  %v2604_v1 = vmul.f32 0.0012755102, %v2440_v48  ;;  %vm1173_vm10 = vweird.f32 %v1770_v31 }
 0x2b0   :  { %1771 = vrsqrt.f32 %v2586_v25  ;;  %v1042_v23 = vmul.f32 0.0012755102, %v1012_v40  ;;  %1440 = vperm.xlu0 %1752, %v1266_v8   ;;  %1296 = vperm.xlu1 %1753, %v1230_v30   ;;  %vm1174_vm12 = vmor %vm1172_vm11, %vm1173_vm10  ;;  %vm1182_vm14 = vweird.f32 %v2586_v25 }
 0x2b1   :  { %v1168_v37 = vmul.f32 %v1770_v31, %v1167_v52  ;;  %v1165_v13 = vsel %vm1164_vm9, %v1768_v42, %v1161_v44  ;;  %v1243_v44 = vld [vmem:[%s3080_s4 + $0x28] sm:$0xff]  ;;  %v2620_v36 = vpop.f32.mrf.mxu2 }
 0x2b2   :  { %v1066_v45 = vsub.f32 %v1042_v23, %v1054_v28  ;;  %v1231_v32 = vmul.f32 %v1165_v13, %v1087_v2  ;;  %v1088_v2 = vld [vmem:[%s3079_s3 + $0x30] sm:$0xff]  ;;  %v1055_v28 = vmul.f32 %v2604_v1, %v2604_v1  ;;  %3087 = vst [vmem:[#allocation7_spill] sm:$0xff] %v2620_v36 }
 0x2b3   :  { %v1169_v56 = vmul.f32 0.5, %v1168_v37 }
 0x2b4   :  { %v1078_v24 = vmax.f32 %v1066_v45, 0.0  ;;  %1301 = vperm.xlu2 %1754, %v1231_v32   ;;  %v1255_v40 = vmul.f32 %v1231_v32, %v2520_v21 }
 0x2b5   :  { %v1170_v47 = vsub.f32 1.5, %v1169_v56  ;;  %v2622_v56 = vpop.f32.mrf.mxu0 }
 0x2b6   :  { %v1772_v8 = vpop.eup %1771  ;;  %v2606_v30 = vadd.f32 1e-05, %v1078_v24  ;;  %v1267_v32 = vsub.f32 %v1243_v44, %v1255_v40  ;;  %3088 = vst [vmem:[#allocation8_spill] sm:$0xff] %v2622_v56  ;;  %v2624_v24 = vpop.f32.mrf.mxu3 }
 0x2b7   :  { %v1177_v52 = vmul.f32 %v1772_v8, %v2586_v25  ;;  %v1015_v42 = vpop.xlane.xlu0 %1014  ;;  %v1171_v48 = vmul.f32 %v1770_v31, %v1170_v47  ;;  %3089 = vst [vmem:[#allocation9_spill] sm:$0xff] %v2624_v24  ;;  %vm1183_vm13 = vweird.f32 %v1772_v8 }
 0x2b8   :  { %1773 = vrsqrt.f32 %v2606_v30  ;;  %v1043_v21 = vmul.f32 0.0012755102, %v1015_v42  ;;  %vm1184_vm15 = vmor %vm1182_vm14, %vm1183_vm13  ;;  %vm1192_vm1 = vweird.f32 %v2606_v30 }
 0x2b9   :  { %v1178_v23 = vmul.f32 %v1772_v8, %v1177_v52  ;;  %v1175_v37 = vsel %vm1174_vm12, %v1770_v31, %v1171_v48  ;;  %v1244_v48 = vld [vmem:[%s3080_s4 + $0x30] sm:$0xff] }
 0x2ba   :  { %v1067_v13 = vsub.f32 %v1043_v21, %v1055_v28  ;;  %v1232_v45 = vmul.f32 %v1175_v37, %v1088_v2  ;;  %v2643_v37 = vpop.f32.mrf.mxu2 }
 0x2bb   :  { %v1179_v47 = vmul.f32 0.5, %v1178_v23  ;;  %3090 = vst [vmem:[#allocation10_spill] sm:$0xff] %v2643_v37 }
 0x2bc   :  { %v1079_v63 = vmax.f32 %v1067_v13, 0.0  ;;  %1306 = vperm.xlu1 %1753, %v1232_v45   ;;  %1445 = vperm.xlu2 %1754, %v1267_v32   ;;  %v1256_v31 = vmul.f32 %v1232_v45, %v2536_v46  ;;  %v2646_v45 = vmul.f32 0.0012755102, %v2464_v17  ;;  %v1245_v17 = vld [vmem:[%s3080_s4 + $0x38] sm:$0xff] }
 0x2bd   :  { %v1180_v42 = vsub.f32 1.5, %v1179_v47  ;;  %v2648_v47 = vpop.f32.mrf.mxu0 }
 0x2be   :  { %v1774_v35 = vpop.eup %1773  ;;  %v2629_v36 = vadd.f32 1e-05, %v1079_v63  ;;  %v1056_v63 = vmul.f32 %v2627_v43, %v2627_v43  ;;  %v1268_v23 = vsub.f32 %v1244_v48, %v1256_v31  ;;  %3091 = vst [vmem:[#allocation11_spill] sm:$0xff] %v2648_v47  ;;  %v1090_v48 = vld [vmem:[%s3079_s3 + $0x40] sm:$0xff] }
 0x2bf   :  { %v1187_v40 = vmul.f32 %v1774_v35, %v2606_v30  ;;  %v1018_v52 = vpop.xlane.xlu1 %1017  ;;  %v1181_v2 = vmul.f32 %v1772_v8, %v1180_v42  ;;  %v2650_v42 = vpop.f32.mrf.mxu3  ;;  %vm1193_vm0 = vweird.f32 %v1774_v35 }
 0x2c0   :  { %1775 = vrsqrt.f32 %v2629_v36  ;;  %v1044_v46 = vmul.f32 0.0012755102, %v1018_v52  ;;  %3092 = vst [vmem:[#allocation12_spill] sm:$0xff] %v2650_v42  ;;  %vm1194_vm2 = vmor %vm1192_vm1, %vm1193_vm0  ;;  %vm1202_vm4 = vweird.f32 %v2629_v36 }
 0x2c1   :  { %v1188_v25 = vmul.f32 %v1774_v35, %v1187_v40  ;;  %v1185_v44 = vsel %vm1184_vm15, %v1772_v8, %v1181_v2 }
 0x2c2   :  { %v1068_v28 = vsub.f32 %v1044_v46, %v1056_v63  ;;  %v1233_v21 = vmul.f32 %v1185_v44, %v1089_v3  ;;  %v1057_v46 = vmul.f32 %v2646_v45, %v2646_v45 }
 0x2c3   :  { %v1189_v13 = vmul.f32 0.5, %v1188_v25 }
 0x2c4   :  { %v1080_v32 = vmax.f32 %v1068_v28, 0.0  ;;  %1311 = vperm.xlu0 %1752, %v1233_v21   ;;  %1450 = vperm.xlu1 %1753, %v1268_v23   ;;  %v1257_v3 = vmul.f32 %v1233_v21, %v2560_v6 }
 0x2c5   :  { %v1190_v52 = vsub.f32 1.5, %v1189_v13  ;;  %v2666_v56 = vpop.f32.mrf.mxu0 }
 0x2c6   :  { %v1776_v40 = vpop.eup %1775  ;;  %v1104_v8 = vadd.f32 1e-05, %v1080_v32  ;;  %v1269_v28 = vsub.f32 %v1245_v17, %v1257_v3  ;;  %v2663_v32 = vpop.f32.mrf.mxu2  ;;  %3093 = vst [vmem:[#allocation13_spill] sm:$0xff] %v2666_v56  ;;  %v1091_v3 = vld [vmem:[%s3079_s3 + $0x48] sm:$0xff]  ;;  %v1246_v17 = vld [vmem:[%s3080_s4 + $0x40] sm:$0xff] }
 0x2c7   :  { %v1197_v31 = vmul.f32 %v1776_v40, %v2629_v36  ;;  %v1021_v2 = vpop.xlane.xlu2 %1020  ;;  %v1191_v63 = vmul.f32 %v1774_v35, %v1190_v52  ;;  %vm1203_vm3 = vweird.f32 %v1776_v40 }
 0x2c8   :  { %1777 = vrsqrt.f32 %v1104_v8  ;;  %v1045_v25 = vmul.f32 0.0012755102, %v1021_v2  ;;  %v2668_v2 = vpop.f32.mrf.mxu3  ;;  %vm1204_vm5 = vmor %vm1202_vm4, %vm1203_vm3  ;;  %vm1212_vm7 = vweird.f32 %v1104_v8 }
 0x2c9   :  { %v1198_v6 = vmul.f32 %v1776_v40, %v1197_v31  ;;  %v1195_v30 = vsel %vm1194_vm2, %v1774_v35, %v1191_v63  ;;  %3094 = vst [vmem:[#allocation14_spill] sm:$0xff] %v2668_v2 }
 0x2ca   :  { %v1069_v44 = vsub.f32 %v1045_v25, %v1057_v46  ;;  %v1234_v21 = vmul.f32 %v1195_v30, %v1090_v48 }
 0x2cb   :  { %v1199_v23 = vmul.f32 0.5, %v1198_v6 }
 0x2cc   :  { %v1081_v13 = vmax.f32 %v1069_v44, 0.0  ;;  %1455 = vperm.xlu0 %1752, %v1269_v28   ;;  %1316 = vperm.xlu2 %1754, %v1234_v21   ;;  %v1258_v37 = vmul.f32 %v1234_v21, %v2583_v20  ;;  %v1247_v28 = vld [vmem:[%s3080_s4 + $0x48] sm:$0xff] }
 0x2cd   :  { %v1200_v47 = vsub.f32 1.5, %v1199_v23  ;;  %v2686_v21 = vpop.f32.mrf.mxu0 }
 0x2ce   :  { %v1778_v52 = vpop.eup %1777  ;;  %v1105_v42 = vadd.f32 1e-05, %v1081_v13  ;;  %v1270_v46 = vsub.f32 %v1246_v17, %v1258_v37  ;;  %v2678_v44 = vpop.f32.mrf.mxu2  ;;  %v1092_v37 = vld [vmem:[%s3079_s3 + $0x50] sm:$0xff] }
 0x2cf   :  { %v1207_v35 = vmul.f32 %v1778_v52, %v1104_v8  ;;  %v1201_v31 = vmul.f32 %v1776_v40, %v1200_v47  ;;  %vm1213_vm6 = vweird.f32 %v1778_v52 }
 0x2d0   :  { %1779 = vrsqrt.f32 %v1105_v42  ;;  %vm1214_vm8 = vmor %vm1212_vm7, %vm1213_vm6  ;;  %v2688_v23 = vpop.f32.mrf.mxu3  ;;  %vm1222_vm10 = vweird.f32 %v1105_v42 }
 0x2d1   :  { %v1208_v48 = vmul.f32 %v1778_v52, %v1207_v35  ;;  %v1205_v20 = vsel %vm1204_vm5, %v1776_v40, %v1201_v31 }
 0x2d2   :  { %v1235_v63 = vmul.f32 %v1205_v20, %v1091_v3  ;;  %v1093_v20 = vld [vmem:[%s3079_s3 + $0x58] sm:$0xff] }
 0x2d3   :  { %v1209_v25 = vmul.f32 0.5, %v1208_v48  ;;  %v1248_v48 = vld [vmem:[%s3080_s4 + $0x50] sm:$0xff] }
 0x2d4   :  { %1321 = vperm.xlu1 %1753, %v1235_v63   ;;  %1460 = vperm.xlu2 %1754, %v1270_v46   ;;  %v1259_v30 = vmul.f32 %v1235_v63, %v2604_v1 }
 0x2d5   :  { %v1210_v36 = vsub.f32 1.5, %v1209_v25 }
 0x2d6   :  { %v1780_v6 = vpop.eup %1779  ;;  %v1271_v35 = vsub.f32 %v1247_v28, %v1259_v30  ;;  %v2699_v30 = vpop.f32.mrf.mxu0 }
 0x2d7   :  { %v1217_v47 = vmul.f32 %v1780_v6, %v1105_v42  ;;  %v1211_v40 = vmul.f32 %v1778_v52, %v1210_v36  ;;  %vm1223_vm9 = vweird.f32 %v1780_v6  ;;  %v1249_v42 = vld [vmem:[%s3080_s4 + $0x58] sm:$0xff] }
 0x2d8   :  { %vm1224_vm11 = vmor %vm1222_vm10, %vm1223_vm9 }
 0x2d9   :  { %v1218_v13 = vmul.f32 %v1780_v6, %v1217_v47  ;;  %v1215_v1 = vsel %vm1214_vm8, %v1778_v52, %v1211_v40  ;;  %v2697_v52 = vpop.f32.mrf.mxu2  ;;  %v2701_v47 = vpop.f32.mrf.mxu3 }
 0x2da   :  { %v1236_v3 = vmul.f32 %v1215_v1, %v1092_v37 }
 0x2db   :  { %v1219_v8 = vmul.f32 0.5, %v1218_v13 }
 0x2dc   :  { %1465 = vperm.xlu1 %1753, %v1271_v35   ;;  %1326 = vperm.xlu0 %1752, %v1236_v3   ;;  %v1260_v17 = vmul.f32 %v1236_v3, %v2627_v43 }
 0x2dd   :  { %v1220_v31 = vsub.f32 1.5, %v1219_v8 }
 0x2de   :  { %v1272_v25 = vsub.f32 %v1248_v48, %v1260_v17  ;;  %v842_v40 = vpop.f32.mrf.mxu0 }
 0x2df   :  { %v1221_v63 = vmul.f32 %v1780_v6, %v1220_v31 }
 0x2e1   :  { %v1225_v46 = vsel %vm1224_vm11, %v1780_v6, %v1221_v63  ;;  %v736_v37 = vpop.f32.mrf.mxu2  ;;  %v789_v13 = vpop.f32.mrf.mxu3 }
 0x2e2   :  { %v1237_v36 = vmul.f32 %v1225_v46, %v1093_v20 }
 0x2e4   :  { %1470 = vperm.xlu0 %1752, %v1272_v25   ;;  %1331 = vperm.xlu2 %1754, %v1237_v36   ;;  %v1261_v43 = vmul.f32 %v1237_v36, %v2646_v45 }
 0x2e6   :  { %v1273_v28 = vsub.f32 %v1249_v42, %v1261_v43  ;;  %v2709_v35 = vpop.f32.mrf.mxu0 }
 0x2e9   :  { %v2707_v6 = vpop.f32.mrf.mxu2  ;;  %v2711_v3 = vpop.f32.mrf.mxu3 }
 0x2ec   :  { %1475 = vperm.xlu2 %1754, %v1273_v28  }
 0x2ee   :  { %v2719_v36 = vpop.f32.mrf.mxu0 }
 0x2f1   :  { %v2714_v45 = vpop.f32.mrf.mxu2  ;;  %v2721_v43 = vpop.f32.mrf.mxu3 }
 0x2f6   :  { %v1287_v1 = vpop.permute.xlu2 %1286 }
 0x2f7   :  { %v1348_v8 = vmul.f32 %v1287_v1, %v2456_v12  ;;  %v1349_v17 = vmul.f32 %v1287_v1, %v2462_v9  ;;  %v1350_v48 = vmul.f32 %v1287_v1, %v2460_v14  ;;  %v1351_v20 = vmul.f32 %v1287_v1, %v2334_v59 }
 0x2f8   :  { %v1352_v63 = vmul.f32 %v1287_v1, %v736_v37  ;;  %v1353_v42 = vmul.f32 %v1287_v1, %v789_v13  ;;  %v1354_v56 = vmul.f32 %v1287_v1, %v842_v40 }
 0x2fe   :  { %v1431_v31 = vpop.permute.xlu2 %1430  ;;  %v1277_v46 = vpop.permute.xlu0 %1276 }
 0x2ff   :  { %v1492_v25 = vadd.f32 %v1431_v31, %v1348_v8  ;;  %v1493_v28 = vadd.f32 %v1431_v31, %v1349_v17  ;;  %v1494_v24 = vadd.f32 %v1431_v31, %v1350_v48  ;;  %v1495_v12 = vadd.f32 %v1431_v31, %v1351_v20  ;;  %v851_v20 = vpop.f32.mrf.mxu0 }
 0x300   :  { %v1496_v2 = vadd.f32 %v1431_v31, %v1352_v63  ;;  %v1334_v59 = vmul.f32 %v1277_v46, %v2430_v50  ;;  %v1497_v9 = vadd.f32 %v1431_v31, %v1353_v42  ;;  %v1335_v37 = vmul.f32 %v1277_v46, %v2434_v49 }
 0x301   :  { %1576 = vst [vmem:[%s3081_s5 + $0x70] sm:$0xff] %v1492_v25  ;;  %v1498_v13 = vadd.f32 %v1431_v31, %v1354_v56  ;;  %v1336_v40 = vmul.f32 %v1277_v46, %v2432_v51  ;;  %v1337_v50 = vmul.f32 %v1277_v46, %v2314_v57  ;;  %v1338_v56 = vmul.f32 %v1277_v46, %v2678_v44 }
 0x302   :  { %v1421_v14 = vpop.permute.xlu1 %1420  ;;  %1577 = vst [vmem:[%s3081_s5 + $0x78] sm:$0xff] %v1493_v28  ;;  %v1340_v31 = vmul.f32 %v1277_v46, %v2686_v21  ;;  %v798_v21 = vpop.f32.mrf.mxu3 }
 0x303   :  { %1578 = vst [vmem:[%s3081_s5 + $0x80] sm:$0xff] %v1494_v24  ;;  %v1478_v1 = vadd.f32 %v1421_v14, %v1334_v59  ;;  %v1479_v8 = vadd.f32 %v1421_v14, %v1335_v37  ;;  %v1480_v51 = vadd.f32 %v1421_v14, %v1336_v40  ;;  %v1339_v24 = vmul.f32 %v1277_v46, %v2688_v23 }
 0x304   :  { %1579 = vst [vmem:[%s3081_s5 + $0x88] sm:$0xff] %v1495_v12  ;;  %v1481_v57 = vadd.f32 %v1421_v14, %v1337_v50  ;;  %v1482_v17 = vadd.f32 %v1421_v14, %v1338_v56  ;;  %v1484_v48 = vadd.f32 %v1421_v14, %v1340_v31 }
 0x305   :  { %1580 = vst [vmem:[%s3081_s5 + $0x90] sm:$0xff] %v1496_v2  ;;  %v745_v2 = vpop.f32.mrf.mxu2  ;;  %v1483_v44 = vadd.f32 %v1421_v14, %v1339_v24 }
 0x306   :  { %v2742_v49 = vpop.permute.xlu2 %1291  ;;  %1581 = vst [vmem:[%s3081_s5 + $0x98] sm:$0xff] %v1497_v9 }
 0x307   :  { %1582 = vst [vmem:[%s3081_s5 + $0xa0] sm:$0xff] %v1498_v13  ;;  %v2798_v13 = vpop.f32.mrf.mxu0 }
 0x308   :  { %1562 = vst [vmem:[%s3081_s5] sm:$0xff] %v1478_v1 }
 0x309   :  { %1563 = vst [vmem:[%s3081_s5 + $0x8] sm:$0xff] %v1479_v8 }
 0x30a   :  { %v1282_v23 = vpop.permute.xlu1 %1281  ;;  %1564 = vst [vmem:[%s3081_s5 + $0x10] sm:$0xff] %v1480_v51  ;;  %v1426_v28 = vpop.permute.xlu0 %1425 }
 0x30b   :  { %v1341_v63 = vmul.f32 %v1282_v23, %v2442_v53  ;;  %v1342_v46 = vmul.f32 %v1282_v23, %v2446_v55  ;;  %v1343_v25 = vmul.f32 %v1282_v23, %v2444_v54  ;;  %v1344_v42 = vmul.f32 %v1282_v23, %v2324_v58  ;;  %1565 = vst [vmem:[%s3081_s5 + $0x18] sm:$0xff] %v1481_v57  ;;  %v2800_v40 = vpop.f32.mrf.mxu3 }
 0x30c   :  { %v1345_v12 = vmul.f32 %v1282_v23, %v2697_v52  ;;  %1566 = vst [vmem:[%s3081_s5 + $0x20] sm:$0xff] %v1482_v17  ;;  %v1346_v14 = vmul.f32 %v1282_v23, %v2701_v47  ;;  %v1347_v58 = vmul.f32 %v1282_v23, %v2699_v30 }
 0x30d   :  { %v1485_v53 = vadd.f32 %v1426_v28, %v1341_v63  ;;  %v1486_v59 = vadd.f32 %v1426_v28, %v1342_v46  ;;  %1567 = vst [vmem:[%s3081_s5 + $0x28] sm:$0xff] %v1483_v44  ;;  %v1487_v54 = vadd.f32 %v1426_v28, %v1343_v25  ;;  %v1488_v52 = vadd.f32 %v1426_v28, %v1344_v42  ;;  %v2790_v30 = vpop.f32.mrf.mxu2 }
 0x30e   :  { %v1302_v55 = vpop.permute.xlu2 %1301  ;;  %1568 = vst [vmem:[%s3081_s5 + $0x30] sm:$0xff] %v1484_v48  ;;  %v1489_v9 = vadd.f32 %v1426_v28, %v1345_v12  ;;  %v1490_v47 = vadd.f32 %v1426_v28, %v1346_v14  ;;  %v1491_v37 = vadd.f32 %v1426_v28, %v1347_v58  ;;  %v1358_v46 = vmul.f32 %v2742_v49, %v2344_v60 }
 0x30f   :  { %1569 = vst [vmem:[%s3081_s5 + $0x38] sm:$0xff] %v1485_v53  ;;  %v1369_v1 = vmul.f32 %v1302_v55, %v2510_v4  ;;  %v1370_v50 = vmul.f32 %v1302_v55, %v2514_v19  ;;  %v1371_v8 = vmul.f32 %v1302_v55, %v2512_v10  ;;  %v1372_v56 = vmul.f32 %v1302_v55, %v2364_v29  ;;  %v2842_v42 = vpop.f32.mrf.mxu0 }
 0x310   :  { %1570 = vst [vmem:[%s3081_s5 + $0x40] sm:$0xff] %v1486_v59  ;;  %v1373_v24 = vmul.f32 %v1302_v55, %v745_v2  ;;  %v1374_v44 = vmul.f32 %v1302_v55, %v798_v21  ;;  %v1375_v23 = vmul.f32 %v1302_v55, %v851_v20  ;;  %v1355_v4 = vmul.f32 %v2742_v49, %v2470_v22 }
 0x311   :  { %1571 = vst [vmem:[%s3081_s5 + $0x48] sm:$0xff] %v1487_v54  ;;  %v1356_v19 = vmul.f32 %v2742_v49, %v2474_v27  ;;  %v1357_v20 = vmul.f32 %v2742_v49, %v2472_v26  ;;  %v1359_v25 = vmul.f32 %v2742_v49, %v2707_v6  ;;  %v1360_v60 = vmul.f32 %v2742_v49, %v2711_v3 }
 0x312   :  { %1572 = vst [vmem:[%s3081_s5 + $0x50] sm:$0xff] %v1488_v52  ;;  %v1361_v6 = vmul.f32 %v2742_v49, %v2709_v35 }
 0x313   :  { %1573 = vst [vmem:[%s3081_s5 + $0x58] sm:$0xff] %v1489_v9  ;;  %v2844_v28 = vpop.f32.mrf.mxu3 }
 0x314   :  { %1574 = vst [vmem:[%s3081_s5 + $0x60] sm:$0xff] %v1490_v47 }
 0x315   :  { %1575 = vst [vmem:[%s3081_s5 + $0x68] sm:$0xff] %v1491_v37  ;;  %v2830_v21 = vpop.f32.mrf.mxu2 }
 0x316   :  { %v1446_v51 = vpop.permute.xlu2 %1445 }
 0x317   :  { %v1513_v31 = vadd.f32 %v1446_v51, %v1369_v1  ;;  %v1514_v57 = vadd.f32 %v1446_v51, %v1370_v50  ;;  %v1515_v17 = vadd.f32 %v1446_v51, %v1371_v8  ;;  %v1516_v48 = vadd.f32 %v1446_v51, %v1372_v56 }
 0x318   :  { %v1517_v63 = vadd.f32 %v1446_v51, %v1373_v24  ;;  %v1518_v10 = vadd.f32 %v1446_v51, %v1374_v44  ;;  %v1519_v2 = vadd.f32 %v1446_v51, %v1375_v23 }
 0x319   :  { %1597 = vst [vmem:[%s3081_s5 + $0x118] sm:$0xff] %v1513_v31 }
 0x31a   :  { %1598 = vst [vmem:[%s3081_s5 + $0x120] sm:$0xff] %v1514_v57  ;;  %v1436_v29 = vpop.permute.xlu1 %1435 }
 0x31b   :  { %1599 = vst [vmem:[%s3081_s5 + $0x128] sm:$0xff] %v1515_v17  ;;  %v1499_v22 = vadd.f32 %v1436_v29, %v1355_v4  ;;  %v1500_v27 = vadd.f32 %v1436_v29, %v1356_v19  ;;  %v1501_v26 = vadd.f32 %v1436_v29, %v1357_v20  ;;  %v1502_v12 = vadd.f32 %v1436_v29, %v1358_v46 }
 0x31c   :  { %1600 = vst [vmem:[%s3081_s5 + $0x130] sm:$0xff] %v1516_v48  ;;  %v1503_v14 = vadd.f32 %v1436_v29, %v1359_v25  ;;  %v1504_v53 = vadd.f32 %v1436_v29, %v1360_v60  ;;  %v1505_v59 = vadd.f32 %v1436_v29, %v1361_v6 }
 0x31d   :  { %1601 = vst [vmem:[%s3081_s5 + $0x138] sm:$0xff] %v1517_v63  ;;  %v754_v1 = vpop.f32.mrf.mxu2 }
 0x31e   :  { %1602 = vst [vmem:[%s3081_s5 + $0x140] sm:$0xff] %v1518_v10 }
 0x31f   :  { %1603 = vst [vmem:[%s3081_s5 + $0x148] sm:$0xff] %v1519_v2 }
 0x320   :  { %1583 = vst [vmem:[%s3081_s5 + $0xa8] sm:$0xff] %v1499_v22 }
 0x321   :  { %1584 = vst [vmem:[%s3081_s5 + $0xb0] sm:$0xff] %v1500_v27 }
 0x322   :  { %1585 = vst [vmem:[%s3081_s5 + $0xb8] sm:$0xff] %v1501_v26  ;;  %v1297_v3 = vpop.permute.xlu1 %1296  ;;  %v1441_v55 = vpop.permute.xlu0 %1440 }
 0x323   :  { %1586 = vst [vmem:[%s3081_s5 + $0xc0] sm:$0xff] %v1502_v12  ;;  %v1362_v35 = vmul.f32 %v1297_v3, %v2482_v39  ;;  %v1363_v49 = vmul.f32 %v1297_v3, %v2492_v15  ;;  %v1364_v58 = vmul.f32 %v1297_v3, %v2489_v7  ;;  %v1365_v54 = vmul.f32 %v1297_v3, %v2354_v61 }
 0x324   :  { %1587 = vst [vmem:[%s3081_s5 + $0xc8] sm:$0xff] %v1503_v14  ;;  %v1366_v52 = vmul.f32 %v1297_v3, %v2714_v45  ;;  %v1367_v9 = vmul.f32 %v1297_v3, %v2721_v43  ;;  %v1368_v39 = vmul.f32 %v1297_v3, %v2719_v36  ;;  %v860_v36 = vpop.f32.mrf.mxu0  ;;  %v807_v43 = vpop.f32.mrf.mxu3 }
 0x325   :  { %1588 = vst [vmem:[%s3081_s5 + $0xd0] sm:$0xff] %v1504_v53  ;;  %v1506_v15 = vadd.f32 %v1441_v55, %v1362_v35  ;;  %v1507_v47 = vadd.f32 %v1441_v55, %v1363_v49  ;;  %v1508_v7 = vadd.f32 %v1441_v55, %v1364_v58  ;;  %v1509_v61 = vadd.f32 %v1441_v55, %v1365_v54  ;;  %v2906_v23 = vpop.f32.mrf.mxu2  ;;  %v3095_v49 = vld [vmem:[#allocation6_spill] sm:$0xff] }
 0x326   :  { %1589 = vst [vmem:[%s3081_s5 + $0xd8] sm:$0xff] %v1505_v59  ;;  %v1317_v37 = vpop.permute.xlu2 %1316  ;;  %v1510_v50 = vadd.f32 %v1441_v55, %v1366_v52  ;;  %v1511_v45 = vadd.f32 %v1441_v55, %v1367_v9  ;;  %v1512_v8 = vadd.f32 %v1441_v55, %v1368_v39  ;;  %v3096_v54 = vld [vmem:[#allocation2_spill] sm:$0xff] }
 0x327   :  { %1590 = vst [vmem:[%s3081_s5 + $0xe0] sm:$0xff] %v1506_v15  ;;  %v1390_v56 = vmul.f32 %v1317_v37, %v2588_v34  ;;  %v1391_v31 = vmul.f32 %v1317_v37, %v2601_v18  ;;  %v1392_v57 = vmul.f32 %v1317_v37, %v2599_v41  ;;  %v1393_v17 = vmul.f32 %v1317_v37, %v2394_v0 }
 0x328   :  { %1591 = vst [vmem:[%s3081_s5 + $0xe8] sm:$0xff] %v1507_v47  ;;  %v1394_v44 = vmul.f32 %v1317_v37, %v754_v1  ;;  %v1395_v63 = vmul.f32 %v1317_v37, %v807_v43  ;;  %v1396_v19 = vmul.f32 %v1317_v37, %v860_v36  ;;  %v3098_v36 = vld [vmem:[#allocation13_spill] sm:$0xff] }
 0x329   :  { %1592 = vst [vmem:[%s3081_s5 + $0xf0] sm:$0xff] %v1508_v7 }
 0x32a   :  { %1593 = vst [vmem:[%s3081_s5 + $0xf8] sm:$0xff] %v1509_v61 }
 0x32b   :  { %1594 = vst [vmem:[%s3081_s5 + $0x100] sm:$0xff] %v1510_v50  ;;  %v3097_v50 = vld [vmem:[#allocation14_spill] sm:$0xff] }
 0x32c   :  { %1595 = vst [vmem:[%s3081_s5 + $0x108] sm:$0xff] %v1511_v45  ;;  %v2911_v34 = vpop.f32.mrf.mxu0  ;;  %v2913_v18 = vpop.f32.mrf.mxu3 }
 0x32d   :  { %1596 = vst [vmem:[%s3081_s5 + $0x110] sm:$0xff] %v1512_v8 }
 0x32e   :  { %v1307_v51 = vpop.permute.xlu1 %1306  ;;  %v1461_v24 = vpop.permute.xlu2 %1460 }
 0x32f   :  { %v1534_v48 = vadd.f32 %v1461_v24, %v1390_v56  ;;  %v1535_v4 = vadd.f32 %v1461_v24, %v1391_v31  ;;  %v1536_v10 = vadd.f32 %v1461_v24, %v1392_v57  ;;  %v1537_v29 = vadd.f32 %v1461_v24, %v1393_v17  ;;  %v3099_v56 = vld [vmem:[#allocation5_spill] sm:$0xff] }
 0x330   :  { %v1538_v2 = vadd.f32 %v1461_v24, %v1394_v44  ;;  %v1539_v41 = vadd.f32 %v1461_v24, %v1395_v63  ;;  %v1540_v0 = vadd.f32 %v1461_v24, %v1396_v19  ;;  %v1376_v20 = vmul.f32 %v1307_v51, %v2533_v5 }
 0x331   :  { %1618 = vst [vmem:[%s3081_s5 + $0x1c0] sm:$0xff] %v1534_v48  ;;  %v1377_v27 = vmul.f32 %v1307_v51, %v2540_v11  ;;  %v1378_v25 = vmul.f32 %v1307_v51, %v2538_v16  ;;  %v1379_v26 = vmul.f32 %v1307_v51, %v2374_v62  ;;  %v1380_v60 = vmul.f32 %v1307_v51, %v2790_v30  ;;  %v2943_v62 = vpop.f32.mrf.mxu2 }
 0x332   :  { %1619 = vst [vmem:[%s3081_s5 + $0x1c8] sm:$0xff] %v1535_v4  ;;  %v1381_v12 = vmul.f32 %v1307_v51, %v2800_v40  ;;  %v1382_v16 = vmul.f32 %v1307_v51, %v2798_v13 }
 0x333   :  { %1620 = vst [vmem:[%s3081_s5 + $0x1d0] sm:$0xff] %v1536_v10 }
 0x334   :  { %1621 = vst [vmem:[%s3081_s5 + $0x1d8] sm:$0xff] %v1537_v29  ;;  %v2951_v40 = vpop.f32.mrf.mxu0  ;;  %v2953_v13 = vpop.f32.mrf.mxu3 }
 0x335   :  { %1622 = vst [vmem:[%s3081_s5 + $0x1e0] sm:$0xff] %v1538_v2 }
 0x336   :  { %v1312_v22 = vpop.permute.xlu0 %1311  ;;  %v1451_v46 = vpop.permute.xlu1 %1450  ;;  %1623 = vst [vmem:[%s3081_s5 + $0x1e8] sm:$0xff] %v1539_v41  ;;  %v3100_v41 = vld [vmem:[#allocation7_spill] sm:$0xff] }
 0x337   :  { %1624 = vst [vmem:[%s3081_s5 + $0x1f0] sm:$0xff] %v1540_v0  ;;  %v1520_v5 = vadd.f32 %v1451_v46, %v1376_v20  ;;  %v1521_v6 = vadd.f32 %v1451_v46, %v1377_v27  ;;  %v1522_v14 = vadd.f32 %v1451_v46, %v1378_v25  ;;  %v1523_v11 = vadd.f32 %v1451_v46, %v1379_v26  ;;  %v3101_v20 = vld [vmem:[#allocation9_spill] sm:$0xff]  ;;  %v3103_v26 = vld [vmem:[#allocation3_spill] sm:$0xff] }
 0x338   :  { %v1524_v53 = vadd.f32 %v1451_v46, %v1380_v60  ;;  %v1525_v30 = vadd.f32 %v1451_v46, %v1381_v12  ;;  %v1526_v59 = vadd.f32 %v1451_v46, %v1382_v16  ;;  %v1383_v3 = vmul.f32 %v1312_v22, %v2563_v33  ;;  %v3102_v46 = vld [vmem:[#allocation8_spill] sm:$0xff] }
 0x339   :  { %1604 = vst [vmem:[%s3081_s5 + $0x150] sm:$0xff] %v1520_v5  ;;  %v1384_v35 = vmul.f32 %v1312_v22, %v2569_v38  ;;  %v1385_v58 = vmul.f32 %v1312_v22, %v3095_v49  ;;  %v1386_v55 = vmul.f32 %v1312_v22, %v3096_v54  ;;  %v1387_v39 = vmul.f32 %v1312_v22, %v2830_v21 }
 0x33a   :  { %1605 = vst [vmem:[%s3081_s5 + $0x158] sm:$0xff] %v1521_v6  ;;  %v1388_v47 = vmul.f32 %v1312_v22, %v2844_v28  ;;  %v1389_v61 = vmul.f32 %v1312_v22, %v2842_v42  ;;  %v763_v42 = vpop.f32.mrf.mxu2 }
 0x33b   :  { %1606 = vst [vmem:[%s3081_s5 + $0x160] sm:$0xff] %v1522_v14 }
 0x33c   :  { %1607 = vst [vmem:[%s3081_s5 + $0x168] sm:$0xff] %v1523_v11  ;;  %v816_v31 = vpop.f32.mrf.mxu3  ;;  %v869_v48 = vpop.f32.mrf.mxu0 }
 0x33d   :  { %1608 = vst [vmem:[%s3081_s5 + $0x170] sm:$0xff] %v1524_v53 }
 0x33e   :  { %v1456_v52 = vpop.permute.xlu0 %1455  ;;  %v1332_v9 = vpop.permute.xlu2 %1331  ;;  %1609 = vst [vmem:[%s3081_s5 + $0x178] sm:$0xff] %v1525_v30 }
 0x33f   :  { %v1527_v33 = vadd.f32 %v1456_v52, %v1383_v3  ;;  %v1528_v38 = vadd.f32 %v1456_v52, %v1384_v35  ;;  %v1529_v15 = vadd.f32 %v1456_v52, %v1385_v58  ;;  %1610 = vst [vmem:[%s3081_s5 + $0x180] sm:$0xff] %v1526_v59  ;;  %v1530_v7 = vadd.f32 %v1456_v52, %v1386_v55  ;;  %v3106_v58 = vld [vmem:[#allocation11_spill] sm:$0xff]  ;;  %v3107_v55 = vld [vmem:[#allocation4_spill] sm:$0xff] }
 0x340   :  { %v1531_v37 = vadd.f32 %v1456_v52, %v1387_v39  ;;  %v1532_v21 = vadd.f32 %v1456_v52, %v1388_v47  ;;  %v1533_v1 = vadd.f32 %v1456_v52, %v1389_v61  ;;  %v1411_v28 = vmul.f32 %v1332_v9, %v2663_v32 }
 0x341   :  { %1611 = vst [vmem:[%s3081_s5 + $0x188] sm:$0xff] %v1527_v33  ;;  %v1412_v45 = vmul.f32 %v1332_v9, %v3097_v50  ;;  %v1413_v43 = vmul.f32 %v1332_v9, %v3098_v36  ;;  %v1414_v51 = vmul.f32 %v1332_v9, %v3099_v56  ;;  %v1415_v57 = vmul.f32 %v1332_v9, %v763_v42 }
 0x342   :  { %1612 = vst [vmem:[%s3081_s5 + $0x190] sm:$0xff] %v1528_v38  ;;  %v1416_v63 = vmul.f32 %v1332_v9, %v816_v31  ;;  %v1417_v10 = vmul.f32 %v1332_v9, %v869_v48 }
 0x343   :  { %1613 = vst [vmem:[%s3081_s5 + $0x198] sm:$0xff] %v1529_v15 }
 0x344   :  { %1614 = vst [vmem:[%s3081_s5 + $0x1a0] sm:$0xff] %v1530_v7 }
 0x345   :  { %1615 = vst [vmem:[%s3081_s5 + $0x1a8] sm:$0xff] %v1531_v37 }
 0x346   :  { %1616 = vst [vmem:[%s3081_s5 + $0x1b0] sm:$0xff] %v1532_v21  ;;  %v1322_v8 = vpop.permute.xlu1 %1321  ;;  %v1476_v24 = vpop.permute.xlu2 %1475 }
 0x347   :  { %1617 = vst [vmem:[%s3081_s5 + $0x1b8] sm:$0xff] %v1533_v1  ;;  %v1555_v17 = vadd.f32 %v1476_v24, %v1411_v28  ;;  %v1556_v32 = vadd.f32 %v1476_v24, %v1412_v45  ;;  %v1557_v44 = vadd.f32 %v1476_v24, %v1413_v43  ;;  %v1558_v4 = vadd.f32 %v1476_v24, %v1414_v51 }
 0x348   :  { %v1559_v29 = vadd.f32 %v1476_v24, %v1415_v57  ;;  %v1560_v19 = vadd.f32 %v1476_v24, %v1416_v63  ;;  %v1561_v2 = vadd.f32 %v1476_v24, %v1417_v10  ;;  %v1397_v0 = vmul.f32 %v1322_v8, %v3100_v41 }
 0x349   :  { %1639 = vst [vmem:[%s3081_s5 + $0x268] sm:$0xff] %v1555_v17  ;;  %v1398_v22 = vmul.f32 %v1322_v8, %v3101_v20  ;;  %v1399_v27 = vmul.f32 %v1322_v8, %v3102_v46  ;;  %v1400_v60 = vmul.f32 %v1322_v8, %v3103_v26  ;;  %v1401_v12 = vmul.f32 %v1322_v8, %v2906_v23  ;;  %v3104_v23 = vld [vmem:[#allocation10_spill] sm:$0xff] }
 0x34a   :  { %1640 = vst [vmem:[%s3081_s5 + $0x270] sm:$0xff] %v1556_v32  ;;  %v1402_v16 = vmul.f32 %v1322_v8, %v2913_v18  ;;  %v1403_v30 = vmul.f32 %v1322_v8, %v2911_v34  ;;  %v3105_v18 = vld [vmem:[#allocation12_spill] sm:$0xff] }
 0x34b   :  { %1641 = vst [vmem:[%s3081_s5 + $0x278] sm:$0xff] %v1557_v44 }
 0x34c   :  { %1642 = vst [vmem:[%s3081_s5 + $0x280] sm:$0xff] %v1558_v4 }
 0x34d   :  { %1643 = vst [vmem:[%s3081_s5 + $0x288] sm:$0xff] %v1559_v29 }
 0x34e   :  { %1644 = vst [vmem:[%s3081_s5 + $0x290] sm:$0xff] %v1560_v19  ;;  %v1327_v25 = vpop.permute.xlu0 %1326  ;;  %v1466_v5 = vpop.permute.xlu1 %1465 }
 0x34f   :  { %1645 = vst [vmem:[%s3081_s5 + $0x298] sm:$0xff] %v1561_v2  ;;  %v1541_v6 = vadd.f32 %v1466_v5, %v1397_v0  ;;  %v1542_v14 = vadd.f32 %v1466_v5, %v1398_v22  ;;  %v1543_v11 = vadd.f32 %v1466_v5, %v1399_v27  ;;  %v1544_v53 = vadd.f32 %v1466_v5, %v1400_v60 }
 0x350   :  { %v1545_v59 = vadd.f32 %v1466_v5, %v1401_v12  ;;  %v1546_v3 = vadd.f32 %v1466_v5, %v1402_v16  ;;  %v1547_v35 = vadd.f32 %v1466_v5, %v1403_v30  ;;  %v1404_v34 = vmul.f32 %v1327_v25, %v3104_v23 }
 0x351   :  { %1625 = vst [vmem:[%s3081_s5 + $0x1f8] sm:$0xff] %v1541_v6  ;;  %v1405_v49 = vmul.f32 %v1327_v25, %v3105_v18  ;;  %v1406_v54 = vmul.f32 %v1327_v25, %v3106_v58  ;;  %v1407_v52 = vmul.f32 %v1327_v25, %v3107_v55  ;;  %v1408_v39 = vmul.f32 %v1327_v25, %v2943_v62 }
 0x352   :  { %1626 = vst [vmem:[%s3081_s5 + $0x200] sm:$0xff] %v1542_v14  ;;  %v1409_v47 = vmul.f32 %v1327_v25, %v2953_v13  ;;  %v1410_v61 = vmul.f32 %v1327_v25, %v2951_v40 }
 0x353   :  { %1627 = vst [vmem:[%s3081_s5 + $0x208] sm:$0xff] %v1543_v11 }
 0x354   :  { %1628 = vst [vmem:[%s3081_s5 + $0x210] sm:$0xff] %v1544_v53 }
 0x355   :  { %1629 = vst [vmem:[%s3081_s5 + $0x218] sm:$0xff] %v1545_v59 }
 0x356   :  { %1630 = vst [vmem:[%s3081_s5 + $0x220] sm:$0xff] %v1546_v3  ;;  %v1471_v9 = vpop.permute.xlu0 %1470 }
 0x357   :  { %1631 = vst [vmem:[%s3081_s5 + $0x228] sm:$0xff] %v1547_v35  ;;  %v1548_v33 = vadd.f32 %v1471_v9, %v1404_v34  ;;  %v1549_v38 = vadd.f32 %v1471_v9, %v1405_v49  ;;  %v1550_v15 = vadd.f32 %v1471_v9, %v1406_v54  ;;  %v1551_v7 = vadd.f32 %v1471_v9, %v1407_v52 }
 0x358   :  { %v1552_v37 = vadd.f32 %v1471_v9, %v1408_v39  ;;  %v1553_v21 = vadd.f32 %v1471_v9, %v1409_v47  ;;  %v1554_v1 = vadd.f32 %v1471_v9, %v1410_v61 }
 0x359   :  { %1632 = vst [vmem:[%s3081_s5 + $0x230] sm:$0xff] %v1548_v33 }
 0x35a   :  { %1633 = vst [vmem:[%s3081_s5 + $0x238] sm:$0xff] %v1549_v38 }
 0x35b   :  { %1634 = vst [vmem:[%s3081_s5 + $0x240] sm:$0xff] %v1550_v15 }
 0x35c   :  { %1635 = vst [vmem:[%s3081_s5 + $0x248] sm:$0xff] %v1551_v7 }
 0x35d   :  { %1636 = vst [vmem:[%s3081_s5 + $0x250] sm:$0xff] %v1552_v37 }
 0x35e   :  { %1637 = vst [vmem:[%s3081_s5 + $0x258] sm:$0xff] %v1553_v21 }
 0x35f   :  { %1638 = vst [vmem:[%s3081_s5 + $0x260] sm:$0xff] %v1554_v1 }

</bundles_post_ra>
